<compile_context>
chip_gen: v7x
topology: tpu7x:2x2x1
jax: 0.10.0
libtpu: 0.0.40
codegen_flags: <defaults>
</compile_context>

<pallas_src>
import jax
import jax.numpy as jnp
from jax import lax
from jax.experimental import pallas as pl
from jax.experimental.pallas import tpu as pltpu

_EPS = 1e-5


def _down_kernel(x_ref, w1_ref, t1_ref, w2_ref, t2_ref, ws_ref, ts_ref,
                 out_ref, pad_p_ref, pad_y_ref):
    Hh = pad_p_ref.shape[0] - 2
    Wh = pad_p_ref.shape[1] - 2
    Cin = pad_p_ref.shape[2]
    Cmid = pad_y_ref.shape[2]
    R = Hh * Wh

    # ---- MaxPool2d(2) from the (Hh, 2, Wh, 2*Cin) view of x ----------------
    r_even = x_ref[0, :, 0, :, :]                        # rows 2i   (Hh, Wh, 2*Cin)
    r_odd = x_ref[0, :, 1, :, :]                         # rows 2i+1
    hmax = jnp.maximum(r_even, r_odd)
    p = jnp.maximum(hmax[:, :, :Cin], hmax[:, :, Cin:])  # (Hh, Wh, Cin) f32

    # ---- halo-padded copy of p (SAME 3x3); zero only the 1-px border -------
    pad_p_ref[0:1, :, :] = jnp.zeros((1, Wh + 2, Cin), pad_p_ref.dtype)
    pad_p_ref[Hh + 1:Hh + 2, :, :] = jnp.zeros((1, Wh + 2, Cin), pad_p_ref.dtype)
    pad_p_ref[1:Hh + 1, 0:1, :] = jnp.zeros((Hh, 1, Cin), pad_p_ref.dtype)
    pad_p_ref[1:Hh + 1, Wh + 1:Wh + 2, :] = jnp.zeros((Hh, 1, Cin), pad_p_ref.dtype)
    pad_p_ref[1:Hh + 1, 1:Wh + 1, :] = p

    # ---- im2col: 9 taps fused along the contraction axis -------------------
    col_p = jnp.concatenate(
        [pad_p_ref[dy:dy + Hh, dx:dx + Wh, :].reshape(R, Cin)
         for dy in range(3) for dx in range(3)], axis=-1)        # (R, 9*Cin) f32
    col_p = col_p.astype(jnp.bfloat16)

    # ---- DenseLayer 0: conv3x3 (BN scale folded into w1) + shift + ReLU ----
    acc1 = jnp.dot(col_p, w1_ref[...], preferred_element_type=jnp.float32)
    y1 = jnp.maximum(acc1 + t1_ref[...], 0.0)                    # (R, Cmid) f32

    pad_y_ref[0:1, :, :] = jnp.zeros((1, Wh + 2, Cmid), pad_y_ref.dtype)
    pad_y_ref[Hh + 1:Hh + 2, :, :] = jnp.zeros((1, Wh + 2, Cmid), pad_y_ref.dtype)
    pad_y_ref[1:Hh + 1, 0:1, :] = jnp.zeros((Hh, 1, Cmid), pad_y_ref.dtype)
    pad_y_ref[1:Hh + 1, Wh + 1:Wh + 2, :] = jnp.zeros((Hh, 1, Cmid), pad_y_ref.dtype)
    pad_y_ref[1:Hh + 1, 1:Wh + 1, :] = y1.reshape(Hh, Wh, Cmid)

    col_y = jnp.concatenate(
        [pad_y_ref[dy:dy + Hh, dx:dx + Wh, :].reshape(R, Cmid)
         for dy in range(3) for dx in range(3)], axis=-1)        # (R, 9*Cmid)
    col_y = col_y.astype(jnp.bfloat16)

    # ---- DenseLayer 1: conv3x3 over cat([p, y1], C) as ONE matmul ----------
    # (w2 is pre-reordered in the wrapper to [p-taps ; y1-taps] along K.)
    acc2 = jnp.dot(jnp.concatenate([col_p, col_y], axis=-1), w2_ref[...],
                   preferred_element_type=jnp.float32)
    y2 = jnp.maximum(acc2 + t2_ref[...], 0.0)                    # (R, Cout) f32

    # ---- shortcut: conv1x1 (BN folded, no bias) + ReLU ----------------------
    sc = jnp.dot(p.reshape(R, Cin).astype(jnp.bfloat16), ws_ref[...],
                 preferred_element_type=jnp.float32)
    sc = jnp.maximum(sc + ts_ref[...], 0.0)                      # (R, Cout)

    # Lane-dense(r) store: (Cout, R); the wrapper only reshapes to NCHW.
    out_ref[0] = jnp.transpose(sc + y2).astype(out_ref.dtype)


def _fold_bn(gamma, beta, mean, var, bias=None, eps=_EPS):
    scale = gamma / jnp.sqrt(var + eps)                          # (C,)
    shift = beta - mean * scale
    if bias is not None:
        shift = shift + bias * scale
    return scale.astype(jnp.float32), shift[None, :].astype(jnp.float32)


def down_forward(x_nchw, prm):
    """Down.forward: input NCHW -> output NCHW (N, Cout, H//2, W//2)."""
    x = jnp.transpose(x_nchw, (0, 2, 3, 1)).astype(jnp.float32)   # -> NHWC
    N, H, W, Cin = x.shape
    assert H % 2 == 0 and W % 2 == 0, "MaxPool2d(2) path assumes even H, W"
    Hh, Wh = H // 2, W // 2
    Cmid = prm["w1"].shape[-1]
    Cout = prm["w2"].shape[-1]
    R = Hh * Wh

    # Metadata-only (free) reshape; pooling happens inside the kernel.
    x_r = x.reshape(N, Hh, 2, Wh, 2 * Cin)

    # Fold conv bias + BN (inference) into per-channel scale/shift, then fold
    # the scale into the weights: y = relu(conv(x, W*scale) + shift).
    s1, t1 = _fold_bn(prm["bn1_g"], prm["bn1_b"], prm["bn1_m"], prm["bn1_v"], prm["b1"])
    s2, t2 = _fold_bn(prm["bn2_g"], prm["bn2_b"], prm["bn2_m"], prm["bn2_v"], prm["b2"])
    ss, ts = _fold_bn(prm["bns_g"], prm["bns_b"], prm["bns_m"], prm["bns_v"], None)

    w1f = (prm["w1"] * s1).reshape(9 * Cin, Cmid).astype(jnp.bfloat16)
    w2s = prm["w2"] * s2                                          # (3,3,Cin+Cmid,Cout)
    w2a = w2s[:, :, :Cin, :].reshape(9 * Cin, Cout)
    w2b = w2s[:, :, Cin:, :].reshape(9 * Cmid, Cout)
    w2f = jnp.concatenate([w2a, w2b], axis=0).astype(jnp.bfloat16)  # (9*(Cin+Cmid), Cout)
    wsf = (prm["ws"].reshape(Cin, Cout) * ss).astype(jnp.bfloat16)

    def full_spec(shape):
        return pl.BlockSpec(shape, lambda b: (0,) * len(shape))

    out_flat = pl.pallas_call(
        _down_kernel,
        out_shape=jax.ShapeDtypeStruct((N, Cout, R), jnp.float32),
        grid_spec=pltpu.PrefetchScalarGridSpec(
            num_scalar_prefetch=0,
            grid=(N,),
            in_specs=[
                pl.BlockSpec((1, Hh, 2, Wh, 2 * Cin), lambda b: (b, 0, 0, 0, 0)),
                full_spec((9 * Cin, Cmid)),
                full_spec((1, Cmid)),
                full_spec((9 * (Cin + Cmid), Cout)),
                full_spec((1, Cout)),
                full_spec((Cin, Cout)),
                full_spec((1, Cout)),
            ],
            out_specs=pl.BlockSpec((1, Cout, R), lambda b: (b, 0, 0)),
            scratch_shapes=[
                pltpu.VMEM((Hh + 2, Wh + 2, Cin), jnp.float32),   # halo'd pooled x
                pltpu.VMEM((Hh + 2, Wh + 2, Cmid), jnp.float32),  # halo'd y1
            ],
        ),
        compiler_params=pltpu.CompilerParams(
            dimension_semantics=("parallel",),
            vmem_limit_bytes=32 * 1024 * 1024,
        ),
    )(x_r, w1f, t1, w2f, t2, wsf, ts)

    return out_flat.reshape(N, Cout, Hh, Wh)                      # already NCHW


# ----------------------------- pure-JAX reference ---------------------------
def _reference(x_nchw, prm, eps=_EPS):
    x = jnp.transpose(x_nchw, (0, 2, 3, 1)).astype(jnp.float32)

    def conv(xx, w, b=None):
        y = lax.conv_general_dilated(
            xx, w, (1, 1), "SAME",
            dimension_numbers=("NHWC", "HWIO", "NHWC"),
            precision=lax.Precision.HIGHEST)
        return y if b is None else y + b

    def bn(xx, g, bta, m, v):
        return (xx - m) / jnp.sqrt(v + eps) * g + bta

    pool = lax.reduce_window(x, -jnp.inf, lax.max,
                             (1, 2, 2, 1), (1, 2, 2, 1), "VALID")
    y1 = jax.nn.relu(bn(conv(pool, prm["w1"], prm["b1"]),
                        prm["bn1_g"], prm["bn1_b"], prm["bn1_m"], prm["bn1_v"]))
    cat = jnp.concatenate([pool, y1], axis=-1)
    y2 = jax.nn.relu(bn(conv(cat, prm["w2"], prm["b2"]),
                        prm["bn2_g"], prm["bn2_b"], prm["bn2_m"], prm["bn2_v"]))
    sc = jax.nn.relu(bn(conv(pool, prm["ws"]),
                        prm["bns_g"], prm["bns_b"], prm["bns_m"], prm["bns_v"]))
    return jnp.transpose(sc + y2, (0, 3, 1, 2))


if __name__ == "__main__":
    N, Cin, H, W = 2, 4, 16, 16
    Cout = 8
    Cmid = Cout

    key = jax.random.PRNGKey(0)
    ks = jax.random.split(key, 20)

    def bn_params(k, c):
        k1, k2, k3, k4 = jax.random.split(k, 4)
        return {
            "g": 1.0 + 0.1 * jax.random.normal(k1, (c,), jnp.float32),
            "b": 0.1 * jax.random.normal(k2, (c,), jnp.float32),
            "m": 0.1 * jax.random.normal(k3, (c,), jnp.float32),
            "v": 0.5 + jnp.abs(jax.random.normal(k4, (c,), jnp.float32)),
        }

    bn1 = bn_params(ks[2], Cmid)
    bn2 = bn_params(ks[3], Cout)
    bns = bn_params(ks[4], Cout)

    params = {
        "w1": 0.2 * jax.random.normal(ks[0], (3, 3, Cin, Cmid), jnp.float32),
        "b1": 0.1 * jax.random.normal(ks[1], (Cmid,), jnp.float32),
        "bn1_g": bn1["g"], "bn1_b": bn1["b"], "bn1_m": bn1["m"], "bn1_v": bn1["v"],
        "w2": 0.2 * jax.random.normal(ks[5], (3, 3, Cin + Cmid, Cout), jnp.float32),
        "b2": 0.1 * jax.random.normal(ks[6], (Cout,), jnp.float32),
        "bn2_g": bn2["g"], "bn2_b": bn2["b"], "bn2_m": bn2["m"], "bn2_v": bn2["v"],
        "ws": 0.2 * jax.random.normal(ks[7], (1, 1, Cin, Cout), jnp.float32),
        "bns_g": bns["g"], "bns_b": bns["b"], "bns_m": bns["m"], "bns_v": bns["v"],
    }

    x = jax.random.normal(ks[19], (N, Cin, H, W), jnp.float32)

    out = down_forward(x, params)
    out = jax.block_until_ready(out)

    assert out.shape == (N, Cout, H // 2, W // 2), out.shape
    ref = _reference(x, params)
    max_err = float(jnp.max(jnp.abs(out - ref)))
    # Tolerance sized for single-pass bf16 MXU matmuls vs. an f32 reference.
    if bool(jnp.allclose(out, ref, atol=5e-2, rtol=5e-2)):
        print("KERNEL_OK")
    else:
        print(f"MISMATCH max_abs_err={max_err}")
</pallas_src>

<mosaic_0001>
module attributes {stable_mosaic.version = 11 : i64} {
  func.func @_down_kernel(%arg0: i32, %arg1: memref<1x8x2x8x8xf32, #tpu.memory_space<vmem>>, %arg2: memref<36x8xbf16, #tpu.memory_space<vmem>>, %arg3: memref<1x8xf32, #tpu.memory_space<vmem>>, %arg4: memref<108x8xbf16, #tpu.memory_space<vmem>>, %arg5: memref<1x8xf32, #tpu.memory_space<vmem>>, %arg6: memref<4x8xbf16, #tpu.memory_space<vmem>>, %arg7: memref<1x8xf32, #tpu.memory_space<vmem>>, %arg8: memref<1x8x64xf32, #tpu.memory_space<vmem>>, %arg9: memref<10x10x4xf32, #tpu.memory_space<vmem>>, %arg10: memref<10x10x8xf32, #tpu.memory_space<vmem>>) attributes {dimension_semantics = [#tpu.dimension_semantics<parallel>], iteration_bounds = array<i64: 2>, scalar_prefetch = 0 : i64, scratch_operands = 2 : i64, tpu.core_type = #tpu.core_type<tc>, window_params = [{transform_indices = @transform_0, window_bounds = array<i64: 1, 8, 2, 8, 8>}, {pipeline_mode = #tpu.pipeline_mode<synchronous>, transform_indices = @transform_1, window_bounds = array<i64: 36, 8>}, {pipeline_mode = #tpu.pipeline_mode<synchronous>, transform_indices = @transform_2, window_bounds = array<i64: 1, 8>}, {pipeline_mode = #tpu.pipeline_mode<synchronous>, transform_indices = @transform_3, window_bounds = array<i64: 108, 8>}, {pipeline_mode = #tpu.pipeline_mode<synchronous>, transform_indices = @transform_4, window_bounds = array<i64: 1, 8>}, {pipeline_mode = #tpu.pipeline_mode<synchronous>, transform_indices = @transform_5, window_bounds = array<i64: 4, 8>}, {pipeline_mode = #tpu.pipeline_mode<synchronous>, transform_indices = @transform_6, window_bounds = array<i64: 1, 8>}, {transform_indices = @transform_7, window_bounds = array<i64: 1, 8, 64>}]} {
    %c0 = arith.constant 0 : index
    %c0_0 = arith.constant 0 : index
    %c0_1 = arith.constant 0 : index
    %c0_2 = arith.constant 0 : index
    %c0_3 = arith.constant 0 : index
    %0 = vector.load %arg1[%c0, %c0_0, %c0_1, %c0_2, %c0_3] : memref<1x8x2x8x8xf32, #tpu.memory_space<vmem>>, vector<1x8x1x8x8xf32>
    %1 = vector.shape_cast %0 : vector<1x8x1x8x8xf32> to vector<8x8x8xf32>
    %c0_4 = arith.constant 0 : index
    %c0_5 = arith.constant 0 : index
    %c1 = arith.constant 1 : index
    %c0_6 = arith.constant 0 : index
    %c0_7 = arith.constant 0 : index
    %2 = vector.load %arg1[%c0_4, %c0_5, %c1, %c0_6, %c0_7] : memref<1x8x2x8x8xf32, #tpu.memory_space<vmem>>, vector<1x8x1x8x8xf32>
    %3 = vector.shape_cast %2 : vector<1x8x1x8x8xf32> to vector<8x8x8xf32>
    %4 = arith.maximumf %1, %3 : vector<8x8x8xf32>
    %5 = vector.extract_strided_slice %4 {offsets = [0, 0, 0], sizes = [8, 8, 4], strides = [1, 1, 1]} : vector<8x8x8xf32> to vector<8x8x4xf32>
    %6 = vector.extract_strided_slice %4 {offsets = [0, 0, 4], sizes = [8, 8, 4], strides = [1, 1, 1]} : vector<8x8x8xf32> to vector<8x8x4xf32>
    %7 = arith.maximumf %5, %6 : vector<8x8x4xf32>
    %cst = arith.constant 0.000000e+00 : f32
    %8 = vector.broadcast %cst : f32 to vector<1x10x4xf32>
    %c0_8 = arith.constant 0 : index
    %c0_9 = arith.constant 0 : index
    %c0_10 = arith.constant 0 : index
    %9 = vector.load %arg9[%c0_8, %c0_9, %c0_10] : memref<10x10x4xf32, #tpu.memory_space<vmem>>, vector<1x10x4xf32>
    tpu.vector_store %arg9[%c0_8, %c0_9, %c0_10], %8 {strides = array<i32>} : memref<10x10x4xf32, #tpu.memory_space<vmem>>, vector<1x10x4xf32>,
    %cst_11 = arith.constant 0.000000e+00 : f32
    %10 = vector.broadcast %cst_11 : f32 to vector<1x10x4xf32>
    %c9 = arith.constant 9 : index
    %c0_12 = arith.constant 0 : index
    %c0_13 = arith.constant 0 : index
    %11 = vector.load %arg9[%c9, %c0_12, %c0_13] : memref<10x10x4xf32, #tpu.memory_space<vmem>>, vector<1x10x4xf32>
    tpu.vector_store %arg9[%c9, %c0_12, %c0_13], %10 {strides = array<i32>} : memref<10x10x4xf32, #tpu.memory_space<vmem>>, vector<1x10x4xf32>,
    %cst_14 = arith.constant 0.000000e+00 : f32
    %12 = vector.broadcast %cst_14 : f32 to vector<8x1x4xf32>
    %c1_15 = arith.constant 1 : index
    %c0_16 = arith.constant 0 : index
    %c0_17 = arith.constant 0 : index
    %13 = vector.load %arg9[%c1_15, %c0_16, %c0_17] : memref<10x10x4xf32, #tpu.memory_space<vmem>>, vector<8x1x4xf32>
    tpu.vector_store %arg9[%c1_15, %c0_16, %c0_17], %12 {strides = array<i32>} : memref<10x10x4xf32, #tpu.memory_space<vmem>>, vector<8x1x4xf32>,
    %cst_18 = arith.constant 0.000000e+00 : f32
    %14 = vector.broadcast %cst_18 : f32 to vector<8x1x4xf32>
    %c1_19 = arith.constant 1 : index
    %c9_20 = arith.constant 9 : index
    %c0_21 = arith.constant 0 : index
    %15 = vector.load %arg9[%c1_19, %c9_20, %c0_21] : memref<10x10x4xf32, #tpu.memory_space<vmem>>, vector<8x1x4xf32>
    tpu.vector_store %arg9[%c1_19, %c9_20, %c0_21], %14 {strides = array<i32>} : memref<10x10x4xf32, #tpu.memory_space<vmem>>, vector<8x1x4xf32>,
    %c1_22 = arith.constant 1 : index
    %c1_23 = arith.constant 1 : index
    %c0_24 = arith.constant 0 : index
    %16 = vector.load %arg9[%c1_22, %c1_23, %c0_24] : memref<10x10x4xf32, #tpu.memory_space<vmem>>, vector<8x8x4xf32>
    tpu.vector_store %arg9[%c1_22, %c1_23, %c0_24], %7 {strides = array<i32>} : memref<10x10x4xf32, #tpu.memory_space<vmem>>, vector<8x8x4xf32>,
    %c0_25 = arith.constant 0 : index
    %c0_26 = arith.constant 0 : index
    %c0_27 = arith.constant 0 : index
    %17 = vector.load %arg9[%c0_25, %c0_26, %c0_27] : memref<10x10x4xf32, #tpu.memory_space<vmem>>, vector<8x8x4xf32>
    %18 = vector.shape_cast %17 : vector<8x8x4xf32> to vector<64x4xf32>
    %c0_28 = arith.constant 0 : index
    %c1_29 = arith.constant 1 : index
    %c0_30 = arith.constant 0 : index
    %19 = vector.load %arg9[%c0_28, %c1_29, %c0_30] : memref<10x10x4xf32, #tpu.memory_space<vmem>>, vector<8x8x4xf32>
    %20 = vector.shape_cast %19 : vector<8x8x4xf32> to vector<64x4xf32>
    %c0_31 = arith.constant 0 : index
    %c2 = arith.constant 2 : index
    %c0_32 = arith.constant 0 : index
    %21 = vector.load %arg9[%c0_31, %c2, %c0_32] : memref<10x10x4xf32, #tpu.memory_space<vmem>>, vector<8x8x4xf32>
    %22 = vector.shape_cast %21 : vector<8x8x4xf32> to vector<64x4xf32>
    %c1_33 = arith.constant 1 : index
    %c0_34 = arith.constant 0 : index
    %c0_35 = arith.constant 0 : index
    %23 = vector.load %arg9[%c1_33, %c0_34, %c0_35] : memref<10x10x4xf32, #tpu.memory_space<vmem>>, vector<8x8x4xf32>
    %24 = vector.shape_cast %23 : vector<8x8x4xf32> to vector<64x4xf32>
    %c1_36 = arith.constant 1 : index
    %c1_37 = arith.constant 1 : index
    %c0_38 = arith.constant 0 : index
    %25 = vector.load %arg9[%c1_36, %c1_37, %c0_38] : memref<10x10x4xf32, #tpu.memory_space<vmem>>, vector<8x8x4xf32>
    %26 = vector.shape_cast %25 : vector<8x8x4xf32> to vector<64x4xf32>
    %c1_39 = arith.constant 1 : index
    %c2_40 = arith.constant 2 : index
    %c0_41 = arith.constant 0 : index
    %27 = vector.load %arg9[%c1_39, %c2_40, %c0_41] : memref<10x10x4xf32, #tpu.memory_space<vmem>>, vector<8x8x4xf32>
    %28 = vector.shape_cast %27 : vector<8x8x4xf32> to vector<64x4xf32>
    %c2_42 = arith.constant 2 : index
    %c0_43 = arith.constant 0 : index
    %c0_44 = arith.constant 0 : index
    %29 = vector.load %arg9[%c2_42, %c0_43, %c0_44] : memref<10x10x4xf32, #tpu.memory_space<vmem>>, vector<8x8x4xf32>
    %30 = vector.shape_cast %29 : vector<8x8x4xf32> to vector<64x4xf32>
    %c2_45 = arith.constant 2 : index
    %c1_46 = arith.constant 1 : index
    %c0_47 = arith.constant 0 : index
    %31 = vector.load %arg9[%c2_45, %c1_46, %c0_47] : memref<10x10x4xf32, #tpu.memory_space<vmem>>, vector<8x8x4xf32>
    %32 = vector.shape_cast %31 : vector<8x8x4xf32> to vector<64x4xf32>
    %c2_48 = arith.constant 2 : index
    %c2_49 = arith.constant 2 : index
    %c0_50 = arith.constant 0 : index
    %33 = vector.load %arg9[%c2_48, %c2_49, %c0_50] : memref<10x10x4xf32, #tpu.memory_space<vmem>>, vector<8x8x4xf32>
    %34 = vector.shape_cast %33 : vector<8x8x4xf32> to vector<64x4xf32>
    %35 = tpu.concatenate %18, %20, %22, %24, %26, %28, %30, %32, %34 in 1 : vector<64x4xf32>, vector<64x4xf32>, vector<64x4xf32>, vector<64x4xf32>, vector<64x4xf32>, vector<64x4xf32>, vector<64x4xf32>, vector<64x4xf32>, vector<64x4xf32> -> vector<64x36xf32>
    %36 = arith.truncf %35 : vector<64x36xf32> to vector<64x36xbf16>
    %c0_51 = arith.constant 0 : index
    %c0_52 = arith.constant 0 : index
    %37 = vector.load %arg2[%c0_51, %c0_52] : memref<36x8xbf16, #tpu.memory_space<vmem>>, vector<36x8xbf16>
    %cst_53 = arith.constant dense<0.000000e+00> : vector<64x8xf32>
    %38 = tpu.matmul %36, %37, %cst_53 {dimension_numbers = #tpu.dot_dimension_numbers<[1], [0], [0], [1], [0, 0, 1, 1], [], []>} : vector<64x36xbf16>, vector<36x8xbf16>, vector<64x8xf32> -> vector<64x8xf32>
    %c0_54 = arith.constant 0 : index
    %c0_55 = arith.constant 0 : index
    %39 = vector.load %arg3[%c0_54, %c0_55] : memref<1x8xf32, #tpu.memory_space<vmem>>, vector<1x8xf32>
    %40 = vector.broadcast %39 : vector<1x8xf32> to vector<64x8xf32>
    %41 = arith.addf %38, %40 : vector<64x8xf32>
    %cst_56 = arith.constant 0.000000e+00 : f32
    %42 = vector.broadcast %cst_56 : f32 to vector<64x8xf32>
    %43 = arith.maximumf %41, %42 : vector<64x8xf32>
    %cst_57 = arith.constant 0.000000e+00 : f32
    %44 = vector.broadcast %cst_57 : f32 to vector<1x10x8xf32>
    %c0_58 = arith.constant 0 : index
    %c0_59 = arith.constant 0 : index
    %c0_60 = arith.constant 0 : index
    %45 = vector.load %arg10[%c0_58, %c0_59, %c0_60] : memref<10x10x8xf32, #tpu.memory_space<vmem>>, vector<1x10x8xf32>
    tpu.vector_store %arg10[%c0_58, %c0_59, %c0_60], %44 {strides = array<i32>} : memref<10x10x8xf32, #tpu.memory_space<vmem>>, vector<1x10x8xf32>,
    %cst_61 = arith.constant 0.000000e+00 : f32
    %46 = vector.broadcast %cst_61 : f32 to vector<1x10x8xf32>
    %c9_62 = arith.constant 9 : index
    %c0_63 = arith.constant 0 : index
    %c0_64 = arith.constant 0 : index
    %47 = vector.load %arg10[%c9_62, %c0_63, %c0_64] : memref<10x10x8xf32, #tpu.memory_space<vmem>>, vector<1x10x8xf32>
    tpu.vector_store %arg10[%c9_62, %c0_63, %c0_64], %46 {strides = array<i32>} : memref<10x10x8xf32, #tpu.memory_space<vmem>>, vector<1x10x8xf32>,
    %cst_65 = arith.constant 0.000000e+00 : f32
    %48 = vector.broadcast %cst_65 : f32 to vector<8x1x8xf32>
    %c1_66 = arith.constant 1 : index
    %c0_67 = arith.constant 0 : index
    %c0_68 = arith.constant 0 : index
    %49 = vector.load %arg10[%c1_66, %c0_67, %c0_68] : memref<10x10x8xf32, #tpu.memory_space<vmem>>, vector<8x1x8xf32>
    tpu.vector_store %arg10[%c1_66, %c0_67, %c0_68], %48 {strides = array<i32>} : memref<10x10x8xf32, #tpu.memory_space<vmem>>, vector<8x1x8xf32>,
    %cst_69 = arith.constant 0.000000e+00 : f32
    %50 = vector.broadcast %cst_69 : f32 to vector<8x1x8xf32>
    %c1_70 = arith.constant 1 : index
    %c9_71 = arith.constant 9 : index
    %c0_72 = arith.constant 0 : index
    %51 = vector.load %arg10[%c1_70, %c9_71, %c0_72] : memref<10x10x8xf32, #tpu.memory_space<vmem>>, vector<8x1x8xf32>
    tpu.vector_store %arg10[%c1_70, %c9_71, %c0_72], %50 {strides = array<i32>} : memref<10x10x8xf32, #tpu.memory_space<vmem>>, vector<8x1x8xf32>,
    %52 = vector.shape_cast %43 : vector<64x8xf32> to vector<8x8x8xf32>
    %c1_73 = arith.constant 1 : index
    %c1_74 = arith.constant 1 : index
    %c0_75 = arith.constant 0 : index
    %53 = vector.load %arg10[%c1_73, %c1_74, %c0_75] : memref<10x10x8xf32, #tpu.memory_space<vmem>>, vector<8x8x8xf32>
    tpu.vector_store %arg10[%c1_73, %c1_74, %c0_75], %52 {strides = array<i32>} : memref<10x10x8xf32, #tpu.memory_space<vmem>>, vector<8x8x8xf32>,
    %c0_76 = arith.constant 0 : index
    %c0_77 = arith.constant 0 : index
    %c0_78 = arith.constant 0 : index
    %54 = vector.load %arg10[%c0_76, %c0_77, %c0_78] : memref<10x10x8xf32, #tpu.memory_space<vmem>>, vector<8x8x8xf32>
    %55 = vector.shape_cast %54 : vector<8x8x8xf32> to vector<64x8xf32>
    %c0_79 = arith.constant 0 : index
    %c1_80 = arith.constant 1 : index
    %c0_81 = arith.constant 0 : index
    %56 = vector.load %arg10[%c0_79, %c1_80, %c0_81] : memref<10x10x8xf32, #tpu.memory_space<vmem>>, vector<8x8x8xf32>
    %57 = vector.shape_cast %56 : vector<8x8x8xf32> to vector<64x8xf32>
    %c0_82 = arith.constant 0 : index
    %c2_83 = arith.constant 2 : index
    %c0_84 = arith.constant 0 : index
    %58 = vector.load %arg10[%c0_82, %c2_83, %c0_84] : memref<10x10x8xf32, #tpu.memory_space<vmem>>, vector<8x8x8xf32>
    %59 = vector.shape_cast %58 : vector<8x8x8xf32> to vector<64x8xf32>
    %c1_85 = arith.constant 1 : index
    %c0_86 = arith.constant 0 : index
    %c0_87 = arith.constant 0 : index
    %60 = vector.load %arg10[%c1_85, %c0_86, %c0_87] : memref<10x10x8xf32, #tpu.memory_space<vmem>>, vector<8x8x8xf32>
    %61 = vector.shape_cast %60 : vector<8x8x8xf32> to vector<64x8xf32>
    %c1_88 = arith.constant 1 : index
    %c1_89 = arith.constant 1 : index
    %c0_90 = arith.constant 0 : index
    %62 = vector.load %arg10[%c1_88, %c1_89, %c0_90] : memref<10x10x8xf32, #tpu.memory_space<vmem>>, vector<8x8x8xf32>
    %63 = vector.shape_cast %62 : vector<8x8x8xf32> to vector<64x8xf32>
    %c1_91 = arith.constant 1 : index
    %c2_92 = arith.constant 2 : index
    %c0_93 = arith.constant 0 : index
    %64 = vector.load %arg10[%c1_91, %c2_92, %c0_93] : memref<10x10x8xf32, #tpu.memory_space<vmem>>, vector<8x8x8xf32>
    %65 = vector.shape_cast %64 : vector<8x8x8xf32> to vector<64x8xf32>
    %c2_94 = arith.constant 2 : index
    %c0_95 = arith.constant 0 : index
    %c0_96 = arith.constant 0 : index
    %66 = vector.load %arg10[%c2_94, %c0_95, %c0_96] : memref<10x10x8xf32, #tpu.memory_space<vmem>>, vector<8x8x8xf32>
    %67 = vector.shape_cast %66 : vector<8x8x8xf32> to vector<64x8xf32>
    %c2_97 = arith.constant 2 : index
    %c1_98 = arith.constant 1 : index
    %c0_99 = arith.constant 0 : index
    %68 = vector.load %arg10[%c2_97, %c1_98, %c0_99] : memref<10x10x8xf32, #tpu.memory_space<vmem>>, vector<8x8x8xf32>
    %69 = vector.shape_cast %68 : vector<8x8x8xf32> to vector<64x8xf32>
    %c2_100 = arith.constant 2 : index
    %c2_101 = arith.constant 2 : index
    %c0_102 = arith.constant 0 : index
    %70 = vector.load %arg10[%c2_100, %c2_101, %c0_102] : memref<10x10x8xf32, #tpu.memory_space<vmem>>, vector<8x8x8xf32>
    %71 = vector.shape_cast %70 : vector<8x8x8xf32> to vector<64x8xf32>
    %72 = tpu.concatenate %55, %57, %59, %61, %63, %65, %67, %69, %71 in 1 : vector<64x8xf32>, vector<64x8xf32>, vector<64x8xf32>, vector<64x8xf32>, vector<64x8xf32>, vector<64x8xf32>, vector<64x8xf32>, vector<64x8xf32>, vector<64x8xf32> -> vector<64x72xf32>
    %73 = arith.truncf %72 : vector<64x72xf32> to vector<64x72xbf16>
    %74 = tpu.concatenate %36, %73 in 1 : vector<64x36xbf16>, vector<64x72xbf16> -> vector<64x108xbf16>
    %c0_103 = arith.constant 0 : index
    %c0_104 = arith.constant 0 : index
    %75 = vector.load %arg4[%c0_103, %c0_104] : memref<108x8xbf16, #tpu.memory_space<vmem>>, vector<108x8xbf16>
    %cst_105 = arith.constant dense<0.000000e+00> : vector<64x8xf32>
    %76 = tpu.matmul %74, %75, %cst_105 {dimension_numbers = #tpu.dot_dimension_numbers<[1], [0], [0], [1], [0, 0, 1, 1], [], []>} : vector<64x108xbf16>, vector<108x8xbf16>, vector<64x8xf32> -> vector<64x8xf32>
    %c0_106 = arith.constant 0 : index
    %c0_107 = arith.constant 0 : index
    %77 = vector.load %arg5[%c0_106, %c0_107] : memref<1x8xf32, #tpu.memory_space<vmem>>, vector<1x8xf32>
    %78 = vector.broadcast %77 : vector<1x8xf32> to vector<64x8xf32>
    %79 = arith.addf %76, %78 : vector<64x8xf32>
    %cst_108 = arith.constant 0.000000e+00 : f32
    %80 = vector.broadcast %cst_108 : f32 to vector<64x8xf32>
    %81 = arith.maximumf %79, %80 : vector<64x8xf32>
    %82 = vector.shape_cast %7 : vector<8x8x4xf32> to vector<64x4xf32>
    %83 = arith.truncf %82 : vector<64x4xf32> to vector<64x4xbf16>
    %c0_109 = arith.constant 0 : index
    %c0_110 = arith.constant 0 : index
    %84 = vector.load %arg6[%c0_109, %c0_110] : memref<4x8xbf16, #tpu.memory_space<vmem>>, vector<4x8xbf16>
    %cst_111 = arith.constant dense<0.000000e+00> : vector<64x8xf32>
    %85 = tpu.matmul %83, %84, %cst_111 {dimension_numbers = #tpu.dot_dimension_numbers<[1], [0], [0], [1], [0, 0, 1, 1], [], []>} : vector<64x4xbf16>, vector<4x8xbf16>, vector<64x8xf32> -> vector<64x8xf32>
    %c0_112 = arith.constant 0 : index
    %c0_113 = arith.constant 0 : index
    %86 = vector.load %arg7[%c0_112, %c0_113] : memref<1x8xf32, #tpu.memory_space<vmem>>, vector<1x8xf32>
    %87 = vector.broadcast %86 : vector<1x8xf32> to vector<64x8xf32>
    %88 = arith.addf %85, %87 : vector<64x8xf32>
    %cst_114 = arith.constant 0.000000e+00 : f32
    %89 = vector.broadcast %cst_114 : f32 to vector<64x8xf32>
    %90 = arith.maximumf %88, %89 : vector<64x8xf32>
    %91 = arith.addf %90, %81 : vector<64x8xf32>
    %92 = tpu.transpose %91, [1, 0] : vector<64x8xf32> -> vector<8x64xf32>
    %c0_115 = arith.constant 0 : index
    %c0_116 = arith.constant 0 : index
    %c0_117 = arith.constant 0 : index
    %93 = vector.load %arg8[%c0_115, %c0_116, %c0_117] : memref<1x8x64xf32, #tpu.memory_space<vmem>>, vector<1x8x64xf32>
    %94 = vector.shape_cast %93 : vector<1x8x64xf32> to vector<8x64xf32>
    %95 = vector.shape_cast %92 : vector<8x64xf32> to vector<1x8x64xf32>
    tpu.vector_store %arg8[%c0_115, %c0_116, %c0_117], %95 {strides = array<i32>} : memref<1x8x64xf32, #tpu.memory_space<vmem>>, vector<1x8x64xf32>,
    return
  }
  func.func @transform_0(%arg0: i32) -> (i32, i32, i32, i32, i32) {
    %c0_i32 = arith.constant 0 : i32
    %c0_i32_0 = arith.constant 0 : i32
    %c0_i32_1 = arith.constant 0 : i32
    %c0_i32_2 = arith.constant 0 : i32
    %c0_i32_3 = arith.constant 0 : i32
    return %arg0, %c0_i32, %c0_i32_0, %c0_i32_1, %c0_i32_2 : i32, i32, i32, i32, i32
  }
  func.func @transform_1(%arg0: i32) -> (i32, i32) {
    %c0_i32 = arith.constant 0 : i32
    %c0_i32_0 = arith.constant 0 : i32
    %c0_i32_1 = arith.constant 0 : i32
    return %c0_i32, %c0_i32_0 : i32, i32
  }
  func.func @transform_2(%arg0: i32) -> (i32, i32) {
    %c0_i32 = arith.constant 0 : i32
    %c0_i32_0 = arith.constant 0 : i32
    %c0_i32_1 = arith.constant 0 : i32
    return %c0_i32, %c0_i32_0 : i32, i32
  }
  func.func @transform_3(%arg0: i32) -> (i32, i32) {
    %c0_i32 = arith.constant 0 : i32
    %c0_i32_0 = arith.constant 0 : i32
    %c0_i32_1 = arith.constant 0 : i32
    return %c0_i32, %c0_i32_0 : i32, i32
  }
  func.func @transform_4(%arg0: i32) -> (i32, i32) {
    %c0_i32 = arith.constant 0 : i32
    %c0_i32_0 = arith.constant 0 : i32
    %c0_i32_1 = arith.constant 0 : i32
    return %c0_i32, %c0_i32_0 : i32, i32
  }
  func.func @transform_5(%arg0: i32) -> (i32, i32) {
    %c0_i32 = arith.constant 0 : i32
    %c0_i32_0 = arith.constant 0 : i32
    %c0_i32_1 = arith.constant 0 : i32
    return %c0_i32, %c0_i32_0 : i32, i32
  }
  func.func @transform_6(%arg0: i32) -> (i32, i32) {
    %c0_i32 = arith.constant 0 : i32
    %c0_i32_0 = arith.constant 0 : i32
    %c0_i32_1 = arith.constant 0 : i32
    return %c0_i32, %c0_i32_0 : i32, i32
  }
  func.func @transform_7(%arg0: i32) -> (i32, i32, i32) {
    %c0_i32 = arith.constant 0 : i32
    %c0_i32_0 = arith.constant 0 : i32
    %c0_i32_1 = arith.constant 0 : i32
    return %arg0, %c0_i32, %c0_i32_0 : i32, i32, i32
  }
}

</mosaic_0001>

<bundles_post_ra>
// kernel: tpu_custom_call.1
= control target key start
LH: loop header
LB: loop body
LE: loop exit
PB: predicated region body
PF: predicated region fallthrough
CT: control target
= control target key end

     0   :  { %12 = vsyncpa [#allocation5], 0  ;;  %s3121_s0 = inlined_call_operand.hbm [shape: f32[2,8,2,8,8], index: 0, kind: input, shape index: {}]   ;;  %s3122_s1 = inlined_call_operand.vmem [shape: bf16[36,8], index: 1, kind: input, shape index: {}]   ;;  %s3123_s2 = inlined_call_operand.vmem [shape: f32[1,8], index: 2, kind: input, shape index: {}]   ;;  %s3124_s3 = inlined_call_operand.vmem [shape: bf16[108,8], index: 3, kind: input, shape index: {}]   ;;  %s3125_s4 = inlined_call_operand.vmem [shape: f32[1,8], index: 4, kind: input, shape index: {}]   ;;  %s3126_s5 = inlined_call_operand.vmem [shape: bf16[4,8], index: 5, kind: input, shape index: {}]   ;;  %s3127_s6 = inlined_call_operand.vmem [shape: f32[1,8], index: 6, kind: input, shape index: {}]   ;;  %s3128_s7 = inlined_call_operand.hbm [shape: f32[2,8,64], index: 7, kind: output, shape index: {}]  }
   0x1   :  { %14 = vsyncpa [#allocation5 + $0x1], 0 }
   0x2   :  { %15 = vsyncpa [#allocation6], 0 }
   0x3   :  { %17 = vsyncpa [#allocation6 + $0x1], 0  ;;  %s2412_s24 = smov 0   ;;  %s2414_s25 = smov 0  }
   0x4   :  { %s2416_s26 = smov 0   ;;  %s2418_s27 = smov 0  }
   0x5 LB: > { %s2433_s28 = sadd.s32 4294967295, %s2351_s27   ;;  %s1743_s29 = sadd.s32 4294967294, %s2351_s27   ;;  %s2351_s27 = sphi %s2418_s27, %s3141_s27   ;;  %s2347_s26 = sphi %s2416_s26, %s3140_s26   ;;  %s2343_s25 = sphi %s2414_s25, %s3139_s25   ;;  %s2339_s24 = sphi %s2412_s24, %s3138_s24  }
   0x6   : > { %s2437_s30 = sadd.s32 1, %s2351_s27   ;;  %s30_s8 = sadd.s32 1, %s2347_s26 }
   0x7   : > { %s27_s9 = ssub.s32 %s2351_s27, %s2437_s30  ;;  %p37_p0 = scmp.ne.s32.totalorder %s2347_s26, %s2343_s25 }
   0x8   : > { %p28_p1 = scmp.eq.s32.totalorder %s27_s9, 0  ;;  %p38_p2 = scmp.eq.s32.totalorder %s2351_s27, 0 }
   0x9   : > { %p43_p3 = scmp.ne.s32.totalorder %s2343_s25, %s2339_s24  ;;  %p44_p4 = scmp.eq.s32.totalorder %s2433_s28, 0 }
   0xa   : > { %s2449_s10 = scalar_select %p28_p1, %s2347_s26, %s30_s8  }
   0xb   : > { %p2451_p5 = por %p38_p2, %p37_p0  ;;  %p2455_p6 = por %p44_p4, %p43_p3 }
   0xc   : > { %p193_p7 = scmp.eq.s32.totalorder %s2433_s28, 1  ;;  %p199_p8 = scmp.eq.s32.totalorder %s1743_s29, 1 }
   0xd   : > { %p1874_p10 = scmp.lt.s32.totalorder %s2351_s27, 2  ;;  %s237_s15 = sand.u32 1, %s2347_s26  }
   0xe   : > { %p2462_p11 = por %p193_p7, %p37_p0  ;;  %p2466_p12 = por %p199_p8, %p43_p3 }
   0xf   : > { %s1789_s16 = sshll.u32 %s2351_s27, 11  ;;  %s1746_s17 = sshll.u32 %s237_s15, 7 }
  0x10   : > { %s3132_s13 = scalar_select %p2462_p11, 1, 0 }
  0x11   : > { %s3133_s14 = scalar_select %p2466_p12, 1, 0 }
  0x12   : > { %s2475_s20 = scalar_lea.hbm %s3121_s0, %s1789_s16  ;;  %s241_s21 = scalar_lea.vmem [#allocation4], %s1746_s17 }
  0x13   : > { %s248_s22 = sshll.u32 %s241_s21, 4  ;;  %p2479_p13 = pnand %p1874_p10, %p2451_p5  ;;  %s2483_s22 = int_to_ptr.vmem [resolvable:$true] %s248_s22 }
  0x14   : > { %s2485_s29 = scalar_lea.sflag [#allocation5], %s237_s15  ;;  %s2255_s8 = scalar_lea.hbm %s2475_s20, 2048 }
  0x15   : > { %p2256_p0 = scmp.ne.s32.totalorder %s2475_s20, %s2255_s8  ;;  %p2257_p1 = pneg %p2479_p13 }
  0x16   : > { %s2260_s16 = scalar_lea.hbm %s3121_s0, 4096  ;;  %p2261_p4 = scmp.lt.u32.totalorder %s2475_s20, %s3121_s0 }
  0x17   : > { %p2258_p2 = pnand %p2257_p1, %p2256_p0  ;;  %p2262_p5 = scmp.lt.u32.totalorder %s2260_s16, %s2255_s8 }
  0x18   : > { %p2264_p8 = scmp.lt.u32.totalorder %s2255_s8, %s2475_s20 }
  0x19   : > { %p2259_p3 = pneg %p2258_p2  ;;  %p2263_p7 = por %p2262_p5, %p2261_p4 }
  0x1b   : > { %p2265_p10 = por %p2264_p8, %p2263_p7 }
  0x1d   : > { %p2266_p9 = pnand %p2265_p10, %p2259_p3 }
  0x1f   : > { %2269 = shalt.err (!%p2266_p9)
}
  0x20   : > { %s2270_s15 = scalar_lea.vmem %s2483_s22, 2048  ;;  %s2353_s19 = smov [#allocation4]  }
  0x21   : > { %p2271_p0 = scmp.ne.s32.totalorder %s2483_s22, %s2270_s15  ;;  %s2275_s21 = sshll.u32 %s2353_s19, 4  ;;  %s2276_s21 = int_to_ptr.vmem [resolvable:$false] %s2275_s21 }
  0x22   : > { %s2277_s9 = scalar_lea.vmem %s2276_s21, 4096  ;;  %p2278_p11 = scmp.lt.s32.totalorder %s2483_s22, %s2276_s21 }
  0x23   : > { %p2273_p2 = pnand %p2271_p0, %p2257_p1  ;;  %p2279_p4 = scmp.lt.s32.totalorder %s2277_s9, %s2270_s15 }
  0x25   : > { %p2274_p12 = pneg %p2273_p2  ;;  %p2280_p5 = por %p2279_p4, %p2278_p11 }
  0x27   : > { %p2281_p7 = pnand %p2280_p5, %p2274_p12 }
  0x29   : > { %2284 = shalt.err (!%p2281_p7)
}
  0x2a   : > { %s2354_s8 = smov 128   ;;  %s2355_s11 = smov 8  }
  0x2b   : > { %1869 = dma.hbm_to_vmem [thread:$0]  (!%p2479_p13), %s2475_s20, 2048, %s2483_s22, %s2485_s29, %s2354_s8, %s2354_s8, %s2355_s11  }
  0x2c   : > { %p1749_p9 = scmp.ge.s32.totalorder %s2351_s27, 1  ;;  %p256_p1 = scmp.lt.s32.totalorder %s2351_s27, 3 }
  0x2e   : > { %p257_p3 = pnand %p1749_p9, %p256_p1 }
  0x2f   : > { %s2516_s16 = sand.u32 (!%p257_p3), 1, %s2343_s25  }
  0x30   : > { %260 = sbr.rel (%p257_p3) target bundleno = 1221 (0x4c5), region = 48  ;;  %s1750_s17 = sshll.u32 (!%p257_p3), %s2516_s16, 7 }
  0x31   : > { %s263_s18 = scalar_lea.sflag (!%p257_p3), [#allocation5], %s2516_s16  ;;  %s2520_s15 = scalar_lea.vmem (!%p257_p3), [#allocation4], %s1750_s17 }
  0x37   : > { %2330 = dma.done.wait (%p2455_p6), %s263_s18, 2048  }
  0x38   : > { %2332 = vsyncadd (%p2455_p6), %s263_s18, 4294965248  ;;  %vm363_vm0 = vcmask 31744   ;;  %vm365_vm1 = vcmask 25600   ;;  %vm371_vm2 = vcmask 24576   ;;  %v2356_v0 = vmov 0.0   ;;  %v300_v1 = vld [vmem:[%s2520_s15 + $0x20] sm:$0xff] }
  0x39   : > { %364 = vst.msk [vmem:[#allocation2] sm:$0xff] %vm363_vm0, %v2356_v0  ;;  %368 = vst.msk [vmem:[#allocation2 + $0x90] sm:$0xff] %vm363_vm0, %v2356_v0  ;;  %v1754_v2 = vld [vmem:[%s2520_s15 + $0x28] sm:$0xff]  ;;  %v298_v3 = vld [vmem:[%s2520_s15] sm:$0xff]  ;;  %s2357_s12 = smov 124   ;;  %vm733_vm3 = vcmask 64512  }
  0x3a   : > { %366 = vst.msk [vmem:[#allocation2 + $0x8] sm:$0x3] %vm365_vm1, %v2356_v0  ;;  %369 = vst.msk [vmem:[#allocation2 + $0x98] sm:$0x3] %vm365_vm1, %v2356_v0  ;;  %v317_v4 = vmax.f32 %v300_v1, %v1754_v2  ;;  %v1752_v5 = vld [vmem:[%s2520_s15 + $0x8] sm:$0xff]  ;;  %v301_v6 = vld [vmem:[%s2520_s15 + $0x30] sm:$0xff] }
  0x3b   : > { %380 = vst.msk [vmem:[#allocation2 + $0x19] sm:$0x1] %vm371_vm2, %v2356_v0  ;;  %372 = vst.msk [vmem:[#allocation2 + $0x10] sm:$0x1] %vm371_vm2, %v2356_v0  ;;  %v1755_v7 = vld [vmem:[%s2520_s15 + $0x38] sm:$0xff]  ;;  %v315_v8 = vmax.f32 %v298_v3, %v1752_v5  ;;  %v299_v9 = vld [vmem:[%s2520_s15 + $0x10] sm:$0xff] }
  0x3c   : > { %373 = vst.msk [vmem:[#allocation2 + $0x20] sm:$0x1] %vm371_vm2, %v2356_v0  ;;  %374 = vst.msk [vmem:[#allocation2 + $0x30] sm:$0x1] %vm371_vm2, %v2356_v0  ;;  %v1753_v10 = vld [vmem:[%s2520_s15 + $0x18] sm:$0xff]  ;;  %335 = vrot.lane.b32.xlu1 %v317_v4, %s2357_s12  ;;  %v318_v11 = vmax.f32 %v301_v6, %v1755_v7  ;;  %v303_v13 = vld [vmem:[%s2520_s15 + $0x50] sm:$0xff] }
  0x3d   : > { %375 = vst.msk [vmem:[#allocation2 + $0x40] sm:$0x1] %vm371_vm2, %v2356_v0  ;;  %376 = vst.msk [vmem:[#allocation2 + $0x50] sm:$0x1] %vm371_vm2, %v2356_v0  ;;  %331 = vrot.lane.b32.xlu0 %v315_v8, %s2357_s12  ;;  %v316_v12 = vmax.f32 %v299_v9, %v1753_v10  ;;  %v1757_v14 = vld [vmem:[%s2520_s15 + $0x58] sm:$0xff]  ;;  %v302_v15 = vld [vmem:[%s2520_s15 + $0x40] sm:$0xff] }
  0x3e   : > { %377 = vst.msk [vmem:[#allocation2 + $0x60] sm:$0x1] %vm371_vm2, %v2356_v0  ;;  %378 = vst.msk [vmem:[#allocation2 + $0x70] sm:$0x1] %vm371_vm2, %v2356_v0  ;;  %v1756_v16 = vld [vmem:[%s2520_s15 + $0x48] sm:$0xff]  ;;  %v305_v17 = vld [vmem:[%s2520_s15 + $0x70] sm:$0xff]  ;;  %v320_v19 = vmax.f32 %v303_v13, %v1757_v14 }
  0x3f   : > { %379 = vst.msk [vmem:[#allocation2 + $0x80] sm:$0x1] %vm371_vm2, %v2356_v0  ;;  %381 = vst.msk [vmem:[#allocation2 + $0x29] sm:$0x1] %vm371_vm2, %v2356_v0  ;;  %v1759_v18 = vld [vmem:[%s2520_s15 + $0x78] sm:$0xff]  ;;  %v304_v20 = vld [vmem:[%s2520_s15 + $0x60] sm:$0xff]  ;;  %v319_v22 = vmax.f32 %v302_v15, %v1756_v16 }
  0x40   : > { %382 = vst.msk [vmem:[#allocation2 + $0x39] sm:$0x1] %vm371_vm2, %v2356_v0  ;;  %383 = vst.msk [vmem:[#allocation2 + $0x49] sm:$0x1] %vm371_vm2, %v2356_v0  ;;  %337 = vrot.lane.b32.xlu1 %v318_v11, %s2357_s12  ;;  %v1758_v21 = vld [vmem:[%s2520_s15 + $0x68] sm:$0xff]  ;;  %v322_v23 = vmax.f32 %v305_v17, %v1759_v18  ;;  %s2358_s20 = smov 4  }
  0x41   : > { %384 = vst.msk [vmem:[#allocation2 + $0x59] sm:$0x1] %vm371_vm2, %v2356_v0  ;;  %385 = vst.msk [vmem:[#allocation2 + $0x69] sm:$0x1] %vm371_vm2, %v2356_v0  ;;  %333 = vrot.lane.b32.xlu0 %v316_v12, %s2357_s12  ;;  %v321_v24 = vmax.f32 %v304_v20, %v1758_v21  ;;  %v404_v37 = vld [vmem:[#allocation2 + $0x1] sm:$0xff]  ;;  %s2359_s22 = smov 8  }
  0x42   : > { %386 = vst.msk [vmem:[#allocation2 + $0x79] sm:$0x1] %vm371_vm2, %v2356_v0  ;;  %387 = vst.msk [vmem:[#allocation2 + $0x89] sm:$0x1] %vm371_vm2, %v2356_v0  ;;  %v412_v44 = vld [vmem:[#allocation2 + $0x2] sm:$0xff]  ;;  %s2360_s23 = smov 12  }
  0x43   : > { %917 = vst.msk [vmem:[#allocation3] sm:$0xff] %vm733_vm3, %v2356_v0  ;;  %921 = vst.msk [vmem:[#allocation3 + $0x90] sm:$0xff] %vm733_vm3, %v2356_v0  ;;  %v2245_v2 = vld [vmem:[%s3122_s1] sm:$0xff]   ;;  %s2361_s21 = smov 16   ;;  %v2246_v6 = vld [vmem:[%s3122_s1 + $0x8] sm:$0xff]   ;;  %s2362_s11 = smov 20  }
  0x44   : > { %341 = vrot.lane.b32.xlu1 %v320_v19, %s2357_s12  ;;  %1813 = vmatprep.subr.bf16.mxu0 %v2245_v2  ;;  %v2247_v10 = vld [vmem:[%s3122_s1 + $0x10] ss:$0 sps:$4 sm:$0x33]   ;;  %s2363_s15 = smov 24   ;;  %vm840_vm4 = vcmask 1041408   ;;  %s2365_s29 = smov 32  }
  0x45   : > { %339 = vrot.lane.b32.xlu0 %v319_v22, %s2357_s12  ;;  %1814 = vmatpush3.bf16.msra.mxu0 %v2245_v2  ;;  %vm742_vm5 = vcmask 97280   ;;  %vm751_vm6 = vcmask 130048   ;;  %vm760_vm7 = vcmask 162816   ;;  %vm769_vm8 = vcmask 195584   ;;  %s2366_s8 = smov 40   ;;  %s2368_s17 = smov 56  }
  0x46   : > { %1815 = vmatprep.subr.bf16.mxu0 %v2246_v6  ;;  %vm778_vm9 = vcmask 228352   ;;  %vm787_vm10 = vcmask 261120   ;;  %vm827_vm11 = vcmask 293888   ;;  %vm924_vm12 = vcmask 57344   ;;  %s2369_s18 = smov 64   ;;  %s1786_s19 = sshll.u32 %s2433_s28, 7 }
  0x47   : > { %vm918_vm13 = vcmask 58368   ;;  %927 = vst.msk [vmem:[#allocation3 + $0x30] sm:$0x1] %vm924_vm12, %v2356_v0  ;;  %928 = vst.msk [vmem:[#allocation3 + $0x40] sm:$0x1] %vm924_vm12, %v2356_v0  ;;  %vm1310_vm14 = vcmask 326656  }
  0x48   : > { %345 = vrot.lane.b32.xlu1 %v322_v23, %s2357_s12  ;;  %925 = vst.msk [vmem:[#allocation3 + $0x10] sm:$0x1] %vm924_vm12, %v2356_v0  ;;  %926 = vst.msk [vmem:[#allocation3 + $0x20] sm:$0x1] %vm924_vm12, %v2356_v0  ;;  %vm1319_vm15 = vcmask 392192   ;;  %vm1337_vm1 = vcmask 523264  }
  0x49   : > { %343 = vrot.lane.b32.xlu0 %v321_v24, %s2357_s12  ;;  %1816 = vmatpush3.bf16.msra.mxu0 %v2246_v6  ;;  %s2364_s12 = smov 28   ;;  %929 = vst.msk [vmem:[#allocation3 + $0x50] sm:$0x1] %vm924_vm12, %v2356_v0  ;;  %930 = vst.msk [vmem:[#allocation3 + $0x60] sm:$0x1] %vm924_vm12, %v2356_v0  ;;  %vm1441_vm2 = vcmask 1045504  }
  0x4a   : > { %1859 = vmatprep.subr.msk.bf16.mxu0 %vm840_vm4, %v2247_v10  ;;  %931 = vst.msk [vmem:[#allocation3 + $0x70] sm:$0x1] %vm924_vm12, %v2356_v0  ;;  %932 = vst.msk [vmem:[#allocation3 + $0x80] sm:$0x1] %vm924_vm12, %v2356_v0  ;;  %p3135_p11 = scmp.ne.s32.totalorder %s3132_s13, 0  ;;  %s2371_s28 = smov [#allocation7]  }
  0x4b   : > { %933 = vst.msk [vmem:[#allocation3 + $0x19] sm:$0x1] %vm924_vm12, %v2356_v0  ;;  %934 = vst.msk [vmem:[#allocation3 + $0x29] sm:$0x1] %vm924_vm12, %v2356_v0 }
  0x4c   : > { %935 = vst.msk [vmem:[#allocation3 + $0x39] sm:$0x1] %vm924_vm12, %v2356_v0  ;;  %936 = vst.msk [vmem:[#allocation3 + $0x49] sm:$0x1] %vm924_vm12, %v2356_v0 }
  0x4d   : > { %937 = vst.msk [vmem:[#allocation3 + $0x59] sm:$0x1] %vm924_vm12, %v2356_v0  ;;  %938 = vst.msk [vmem:[#allocation3 + $0x69] sm:$0x1] %vm924_vm12, %v2356_v0 }
  0x4e   : > { %939 = vst.msk [vmem:[#allocation3 + $0x79] sm:$0x1] %vm924_vm12, %v2356_v0  ;;  %940 = vst.msk [vmem:[#allocation3 + $0x89] sm:$0x1] %vm924_vm12, %v2356_v0 }
  0x4f   : > { %919 = vst.msk [vmem:[#allocation3 + $0x8] sm:$0x3] %vm918_vm13, %v2356_v0  ;;  %922 = vst.msk [vmem:[#allocation3 + $0x98] sm:$0x3] %vm918_vm13, %v2356_v0 }
  0xae   : > { %v336_v25 = vpop.permute.xlu1 %335 }
  0xaf   : > { %v2580_v26 = vmax.f32 %v317_v4, %v336_v25  ;;  %v332_v27 = vpop.permute.xlu0 %331 }
  0xb0   : > { %v2582_v28 = vmax.f32 %v315_v8, %v332_v27 }
  0xb1   : > { %390 = vst.msk [vmem:[#allocation2 + $0x31] sm:$0xff] %vm363_vm0, %v2580_v26 }
  0xb2   : > { %388 = vst.msk [vmem:[#allocation2 + $0x11] sm:$0xff] %vm363_vm0, %v2582_v28  ;;  %v338_v29 = vpop.permute.xlu1 %337 }
  0xb3   : > { %v2588_v30 = vmax.f32 %v318_v11, %v338_v29  ;;  %v334_v31 = vpop.permute.xlu0 %333  ;;  %v842_v11 = vsel %vm840_vm4, %v2247_v10, 0 }
  0xb4   : > { %v2590_v32 = vmax.f32 %v316_v12, %v334_v31  ;;  %1818 = vmatpush3.bf16.msra.mxu0 %v842_v11 }
  0xb5   : > { %391 = vst.msk [vmem:[#allocation2 + $0x41] sm:$0xff] %vm363_vm0, %v2588_v30  ;;  %v1519_v33 = vpack.c.bf16 %v2588_v30, %v2580_v26  ;;  %v1760_v26 = vld [vmem:[%s3123_s2] ss:$0 sm:$0xff] }
  0xb6   : > { %389 = vst.msk [vmem:[#allocation2 + $0x21] sm:$0xff] %vm363_vm0, %v2590_v32  ;;  %v1518_v34 = vpack.c.bf16 %v2590_v32, %v2582_v28  ;;  %v342_v35 = vpop.permute.xlu1 %341 }
  0xb7   : > { %v340_v36 = vpop.permute.xlu0 %339  ;;  %v2604_v38 = vmax.f32 %v320_v19, %v342_v35 }
  0xb8   : > { %v2606_v39 = vmax.f32 %v319_v22, %v340_v36  ;;  %v407_v46 = vld [vmem:[#allocation2 + $0x31] sm:$0xff] }
  0xb9   : > { %v405_v40 = vld [vmem:[#allocation2 + $0x11] sm:$0xff]  ;;  %393 = vst.msk [vmem:[#allocation2 + $0x61] sm:$0xff] %vm363_vm0, %v2604_v38 }
  0xba   : > { %392 = vst.msk [vmem:[#allocation2 + $0x51] sm:$0xff] %vm363_vm0, %v2606_v39  ;;  %v1925_v41 = vpack.i.bf16 %v405_v40, %v404_v37  ;;  %v1520_v42 = vpack.c.bf16 %v2604_v38, %v2606_v39  ;;  %v346_v43 = vpop.permute.xlu1 %345  ;;  %v413_v45 = vld [vmem:[#allocation2 + $0x12] sm:$0xff] }
  0xbb   : > { %v2614_v47 = vmax.f32 %v322_v23, %v346_v43  ;;  %v344_v48 = vpop.permute.xlu0 %343  ;;  %v1935_v51 = vpack.i.bf16 %v413_v45, %v412_v44  ;;  %v415_v55 = vld [vmem:[#allocation2 + $0x32] sm:$0xff] }
  0xbc   : > { %1926 = vrot.lane.b32.xlu0 %v1925_v41, %s2358_s20  ;;  %v2617_v49 = vmax.f32 %v321_v24, %v344_v48  ;;  %v2629_v57 = vld [vmem:[#allocation2 + $0x10] sm:$0xff]  ;;  %v2635_v61 = vld [vmem:[#allocation2 + $0x40] sm:$0xff] }
  0xbd   : > { %v406_v50 = vld [vmem:[#allocation2 + $0x21] sm:$0xff]  ;;  %395 = vst.msk [vmem:[#allocation2 + $0x81] sm:$0xff] %vm363_vm0, %v2614_v47  ;;  %v2633_v60 = vld [vmem:[#allocation2 + $0x30] sm:$0xff] }
  0xbe   : > { %v1930_v52 = vpack.i.bf16 %v407_v46, %v406_v50  ;;  %394 = vst.msk [vmem:[#allocation2 + $0x71] sm:$0xff] %vm363_vm0, %v2617_v49  ;;  %v2623_v53 = vld [vmem:[#allocation2 + $0x20] sm:$0xff]  ;;  %v1521_v56 = vpack.c.bf16 %v2614_v47, %v2617_v49  ;;  %v1955_v62 = vpack.i.bf16 %v406_v50, %v405_v40  ;;  %v1950_v63 = vpack.i.bf16 %v2635_v61, %v2633_v60  ;;  %v452_v44 = vld [vmem:[#allocation2 + $0x90] sm:$0xff] }
  0xbf   : > { %v414_v54 = vld [vmem:[#allocation2 + $0x22] sm:$0xff]  ;;  %v1945_v58 = vpack.i.bf16 %v2623_v53, %v2629_v57  ;;  %v1975_v7 = vpack.i.bf16 %v2633_v60, %v2623_v53  ;;  %v1522_v48 = vld [vmem:[%s3126_s5] sm:$0x3] }
  0xc0   : > { %1936 = vrot.lane.b32.xlu0 %v1935_v51, %s2359_s22  ;;  %1931 = vrot.lane.b32.xlu1 %v1930_v52, %s2358_s20  ;;  %v1940_v59 = vpack.i.bf16 %v415_v55, %v414_v54  ;;  %v431_v1 = vld [vmem:[#allocation2 + $0x41] sm:$0xff]  ;;  %v1965_v3 = vpack.i.bf16 %v414_v54, %v413_v45  ;;  %v2696_v51 = vsel %vm840_vm4, %v1522_v48, 0 }
  0xc1   : > { %v1960_v4 = vpack.i.bf16 %v431_v1, %v407_v46  ;;  %v439_v5 = vld [vmem:[#allocation2 + $0x42] sm:$0xff]  ;;  %v2653_v9 = vld [vmem:[#allocation2 + $0x50] sm:$0xff]  ;;  %1861 = vmatprep.subr.msk.bf16.mxu0 %vm840_vm4, %v1522_v48 }
  0xc2   : > { %v1970_v8 = vpack.i.bf16 %v439_v5, %v415_v55  ;;  %v1980_v12 = vpack.i.bf16 %v2653_v9, %v2635_v61  ;;  %v456_v13 = vld [vmem:[#allocation2 + $0x51] sm:$0xff]  ;;  %v410_v18 = vld [vmem:[#allocation2 + $0x61] sm:$0xff] }
  0xc3   : > { %v1990_v14 = vpack.i.bf16 %v456_v13, %v431_v1  ;;  %v464_v15 = vld [vmem:[#allocation2 + $0x52] sm:$0xff]  ;;  %v2670_v20 = vld [vmem:[#allocation2 + $0x60] sm:$0xff]  ;;  %v2035_v29 = vpack.i.bf16 %v410_v18, %v456_v13 }
  0xc4   : > { %1946 = vrot.lane.b32.xlu0 %v1945_v58, %s2360_s23  ;;  %1941 = vrot.lane.b32.xlu1 %v1940_v59, %s2359_s22  ;;  %v2005_v17 = vpack.i.bf16 %v464_v15, %v439_v5  ;;  %v418_v22 = vld [vmem:[#allocation2 + $0x62] sm:$0xff]  ;;  %v2025_v23 = vpack.i.bf16 %v2670_v20, %v2653_v9  ;;  %v460_v46 = vld [vmem:[#allocation2 + $0x91] sm:$0xff] }
  0xc5   : > { %v411_v16 = vld [vmem:[#allocation2 + $0x71] sm:$0xff]  ;;  %v427_v27 = vld [vmem:[#allocation2 + $0x80] sm:$0xff]  ;;  %v2045_v36 = vpack.i.bf16 %v418_v22, %v464_v15 }
  0xc6   : > { %v2010_v19 = vpack.i.bf16 %v411_v16, %v410_v18  ;;  %v419_v21 = vld [vmem:[#allocation2 + $0x72] sm:$0xff]  ;;  %v435_v35 = vld [vmem:[#allocation2 + $0x81] sm:$0xff]  ;;  %v2060_v45 = vpack.i.bf16 %v452_v44, %v427_v27 }
  0xc7   : > { %v2020_v24 = vpack.i.bf16 %v419_v21, %v418_v22  ;;  %v2676_v25 = vld [vmem:[#allocation2 + $0x70] sm:$0xff]  ;;  %v2040_v37 = vpack.i.bf16 %v435_v35, %v411_v16  ;;  %v443_v40 = vld [vmem:[#allocation2 + $0x82] sm:$0xff]  ;;  %v2070_v50 = vpack.i.bf16 %v460_v46, %v435_v35 }
  0xc8   : > { %1956 = vrot.lane.b32.xlu0 %v1955_v62, %s2361_s21  ;;  %1951 = vrot.lane.b32.xlu1 %v1950_v63, %s2360_s23  ;;  %v2030_v31 = vpack.i.bf16 %v427_v27, %v2676_v25  ;;  %v2055_v41 = vpack.i.bf16 %v2676_v25, %v2670_v20  ;;  %v2050_v43 = vpack.i.bf16 %v443_v40, %v419_v21 }
  0xcc   : > { %1966 = vrot.lane.b32.xlu0 %v1965_v3, %s2362_s11  ;;  %1961 = vrot.lane.b32.xlu1 %v1960_v4, %s2361_s21 }
  0xd0   : > { %1976 = vrot.lane.b32.xlu0 %v1975_v7, %s2363_s15  ;;  %1971 = vrot.lane.b32.xlu1 %v1970_v8, %s2362_s11  ;;  %v396_v7 = vld [vmem:[#allocation2] sm:$0xff] }
  0xd4   : > { %1986 = vrot.lane.b32.xlu0 %v1930_v52, %s2364_s12  ;;  %1981 = vrot.lane.b32.xlu1 %v1980_v12, %s2363_s15  ;;  %v468_v52 = vld [vmem:[#allocation2 + $0x92] sm:$0xff] }
  0xd5   : > { %v2080_v54 = vpack.i.bf16 %v468_v52, %v443_v40 }
  0xd8   : > { %1996 = vrot.lane.b32.xlu0 %v1940_v59, %s2365_s29  ;;  %1991 = vrot.lane.b32.xlu1 %v1990_v14, %s2364_s12 }
  0xdc   : > { %2006 = vrot.lane.b32.xlu0 %v2005_v17, %s2365_s29  ;;  %2001 = vrot.lane.b32.xlu1 %v1990_v14, %s2358_s20 }
  0xe0   : > { %2016 = vrot.lane.b32.xlu0 %v2005_v17, %s2359_s22  ;;  %2011 = vrot.lane.b32.xlu1 %v2010_v19, %s2358_s20 }
  0xe4   : > { %2026 = vrot.lane.b32.xlu0 %v2025_v23, %s2360_s23  ;;  %2021 = vrot.lane.b32.xlu1 %v2020_v24, %s2359_s22 }
  0xe8   : > { %2036 = vrot.lane.b32.xlu0 %v2035_v29, %s2361_s21  ;;  %2031 = vrot.lane.b32.xlu1 %v2030_v31, %s2360_s23 }
  0xec   : > { %2046 = vrot.lane.b32.xlu0 %v2045_v36, %s2362_s11  ;;  %2041 = vrot.lane.b32.xlu1 %v2040_v37, %s2361_s21 }
  0xf0   : > { %2056 = vrot.lane.b32.xlu0 %v2055_v41, %s2363_s15  ;;  %2051 = vrot.lane.b32.xlu1 %v2050_v43, %s2362_s11  ;;  %s2367_s11 = smov 48  }
  0xf4   : > { %2066 = vrot.lane.b32.xlu0 %v2010_v19, %s2364_s12  ;;  %2061 = vrot.lane.b32.xlu1 %v2060_v45, %s2363_s15 }
  0xf8   : > { %2076 = vrot.lane.b32.xlu0 %v2020_v24, %s2365_s29  ;;  %2071 = vrot.lane.b32.xlu1 %v2070_v50, %s2364_s12  ;;  %s2370_s12 = smov 36  }
  0xfc   : > { %2081 = vrot.lane.b32.xlu1 %v2080_v54, %s2365_s29 }
 0x12e   : > { %v1927_v55 = vpop.permute.xlu0 %1926 }
 0x12f   : > { %v1929_v3 = vunpack.i.h.bf16 %v1927_v55  ;;  %v1928_v4 = vunpack.i.l.bf16 %v1927_v55 }
 0x131   : > { %v726_v13 = vsel %vm363_vm0, %v2629_v57, %v1929_v3  ;;  %v725_v14 = vsel %vm363_vm0, %v396_v7, %v1928_v4 }
 0x132   : > { %v1932_v58 = vpop.permute.xlu1 %1931  ;;  %v1937_v59 = vpop.permute.xlu0 %1936 }
 0x133   : > { %v1934_v8 = vunpack.i.h.bf16 %v1932_v58  ;;  %v1933_v10 = vunpack.i.l.bf16 %v1932_v58  ;;  %v1939_v11 = vunpack.i.h.bf16 %v1937_v59  ;;  %v1938_v12 = vunpack.i.l.bf16 %v1937_v59 }
 0x135   : > { %v728_v24 = vsel %vm363_vm0, %v2633_v60, %v1934_v8  ;;  %v727_v27 = vsel %vm363_vm0, %v2623_v53, %v1933_v10  ;;  %v734_v57 = vsel %vm733_vm3, %v725_v14, %v1938_v12  ;;  %v735_v35 = vsel %vm733_vm3, %v726_v13, %v1939_v11 }
 0x136   : > { %v1942_v62 = vpop.permute.xlu1 %1941  ;;  %v1947_v63 = vpop.permute.xlu0 %1946 }
 0x137   : > { %v1944_v15 = vunpack.i.h.bf16 %v1942_v62  ;;  %v1943_v16 = vunpack.i.l.bf16 %v1942_v62  ;;  %v1949_v19 = vunpack.i.h.bf16 %v1947_v63  ;;  %v1948_v21 = vunpack.i.l.bf16 %v1947_v63 }
 0x139   : > { %v736_v40 = vsel %vm733_vm3, %v727_v27, %v1943_v16  ;;  %v737_v41 = vsel %vm733_vm3, %v728_v24, %v1944_v15  ;;  %v743_v46 = vsel %vm742_vm5, %v734_v57, %v1948_v21  ;;  %v744_v53 = vsel %vm742_vm5, %v735_v35, %v1949_v19 }
 0x13a   : > { %v1952_v1 = vpop.permute.xlu1 %1951  ;;  %v1957_v2 = vpop.permute.xlu0 %1956 }
 0x13b   : > { %v1954_v22 = vunpack.i.h.bf16 %v1952_v1  ;;  %v1953_v23 = vunpack.i.l.bf16 %v1952_v1  ;;  %v1959_v29 = vunpack.i.h.bf16 %v1957_v2  ;;  %v1958_v31 = vunpack.i.l.bf16 %v1957_v2 }
 0x13d   : > { %v745_v48 = vsel %vm742_vm5, %v736_v40, %v1953_v23  ;;  %v746_v50 = vsel %vm742_vm5, %v737_v41, %v1954_v22  ;;  %v752_v52 = vsel %vm751_vm6, %v743_v46, %v1958_v31  ;;  %v753_v54 = vsel %vm751_vm6, %v744_v53, %v1959_v29 }
 0x13e   : > { %v2701_v5 = vpop.permute.xlu1 %1961  ;;  %v1967_v6 = vpop.permute.xlu0 %1966 }
 0x13f   : > { %v1969_v36 = vunpack.i.h.bf16 %v1967_v6  ;;  %v1968_v37 = vunpack.i.l.bf16 %v1967_v6  ;;  %v1964_v59 = vunpack.i.h.bf16 %v2701_v5  ;;  %v1963_v62 = vunpack.i.l.bf16 %v2701_v5 }
 0x141   : > { %v761_v63 = vsel %vm760_vm7, %v752_v52, %v1968_v37  ;;  %v762_v1 = vsel %vm760_vm7, %v753_v54, %v1969_v36 }
 0x142   : > { %v1972_v17 = vpop.permute.xlu1 %1971  ;;  %v1977_v18 = vpop.permute.xlu0 %1976 }
 0x143   : > { %v1979_v43 = vunpack.i.h.bf16 %v1977_v18  ;;  %v1978_v44 = vunpack.i.l.bf16 %v1977_v18  ;;  %v1974_v2 = vunpack.i.h.bf16 %v1972_v17  ;;  %v1973_v3 = vunpack.i.l.bf16 %v1972_v17 }
 0x144   : > { %v754_v18 = vsel %vm751_vm6, %v745_v48, %v1963_v62  ;;  %v755_v17 = vsel %vm751_vm6, %v746_v50, %v1964_v59 }
 0x145   : > { %v770_v4 = vsel %vm769_vm8, %v761_v63, %v1978_v44  ;;  %v771_v6 = vsel %vm769_vm8, %v762_v1, %v1979_v43  ;;  %v763_v22 = vsel %vm760_vm7, %v754_v18, %v1973_v3  ;;  %v764_v23 = vsel %vm760_vm7, %v755_v17, %v1974_v2 }
 0x146   : > { %v1982_v45 = vpop.permute.xlu1 %1981  ;;  %v1987_v60 = vpop.permute.xlu0 %1986 }
 0x147   : > { %v1989_v55 = vunpack.i.h.bf16 %v1987_v60  ;;  %v1988_v58 = vunpack.i.l.bf16 %v1987_v60  ;;  %v1984_v10 = vunpack.i.h.bf16 %v1982_v45  ;;  %v1983_v11 = vunpack.i.l.bf16 %v1982_v45 }
 0x149   : > { %v779_v5 = vsel %vm778_vm9, %v770_v4, %v1988_v58  ;;  %v780_v16 = vsel %vm778_vm9, %v771_v6, %v1989_v55  ;;  %v773_v31 = vsel %vm769_vm8, %v764_v23, %v1984_v10  ;;  %v772_v57 = vsel %vm769_vm8, %v763_v22, %v1983_v11 }
 0x14a   : > { %v1992_v7 = vpop.permute.xlu1 %1991  ;;  %v1997_v8 = vpop.permute.xlu0 %1996 }
 0x14b   : > { %v1999_v12 = vunpack.i.h.bf16 %v1997_v8  ;;  %v1998_v13 = vunpack.i.l.bf16 %v1997_v8  ;;  %v1994_v14 = vunpack.i.h.bf16 %v1992_v7  ;;  %v1993_v15 = vunpack.i.l.bf16 %v1992_v7 }
 0x14d   : > { %v788_v19 = vsel %vm787_vm10, %v779_v5, %v1998_v13  ;;  %v789_v21 = vsel %vm787_vm10, %v780_v16, %v1999_v12  ;;  %v781_v37 = vsel %vm778_vm9, %v772_v57, %v1993_v15  ;;  %v782_v40 = vsel %vm778_vm9, %v773_v31, %v1994_v14 }
 0x14e   : > { %v2002_v24 = vpop.permute.xlu1 %2001  ;;  %v2007_v27 = vpop.permute.xlu0 %2006  ;;  %v2734_v29 = vpack.c.bf16 %v789_v21, %v788_v19 }
 0x14f   : > { %v2009_v35 = vunpack.i.h.bf16 %v2007_v27  ;;  %v2008_v36 = vunpack.i.l.bf16 %v2007_v27  ;;  %v2004_v52 = vunpack.i.h.bf16 %v2002_v24  ;;  %v2003_v54 = vunpack.i.l.bf16 %v2002_v24 }
 0x150   : > { %1819 = vmatprep.mubr.msk.bf16.mxu0 %vm827_vm11, %v2734_v29 }
 0x151   : > { %v791_v41 = vsel %vm787_vm10, %v782_v40, %v2009_v35  ;;  %v790_v43 = vsel %vm787_vm10, %v781_v37, %v2008_v36  ;;  %v729_v2 = vsel %vm363_vm0, %v2635_v61, %v2003_v54  ;;  %v730_v3 = vsel %vm363_vm0, %v2653_v9, %v2004_v52 }
 0x152   : > { %v2744_v44 = vpack.c.bf16 %v791_v41, %v790_v43  ;;  %v2012_v45 = vpop.permute.xlu1 %2011  ;;  %v2017_v60 = vpop.permute.xlu0 %2016 }
 0x153   : > { %v2014_v59 = vunpack.i.h.bf16 %v2012_v45  ;;  %v2013_v62 = vunpack.i.l.bf16 %v2012_v45  ;;  %v2019_v63 = vunpack.i.h.bf16 %v2017_v60  ;;  %v2018_v1 = vunpack.i.l.bf16 %v2017_v60 }
 0x154   : > { %1820 = vmatmul.mubr.msk.bf16.vlgmr.msra.gmra.mrb[0].mxu0 %vm827_vm11, %v2744_v44 }
 0x155   : > { %1850 = vmatpush3.bf16.msra.mxu0 %v2696_v51  ;;  %v731_v13 = vsel %vm363_vm0, %v2670_v20, %v2013_v62  ;;  %v732_v14 = vsel %vm363_vm0, %v2676_v25, %v2014_v59  ;;  %v739_v61 = vsel %vm733_vm3, %v730_v3, %v2019_v63  ;;  %v738_v9 = vsel %vm733_vm3, %v729_v2, %v2018_v1 }
 0x156   : > { %v2022_v46 = vpop.permute.xlu1 %2021  ;;  %v2027_v53 = vpop.permute.xlu0 %2026 }
 0x157   : > { %v2024_v4 = vunpack.i.h.bf16 %v2022_v46  ;;  %v2023_v51 = vunpack.i.l.bf16 %v2022_v46  ;;  %v2029_v8 = vunpack.i.h.bf16 %v2027_v53  ;;  %v2028_v10 = vunpack.i.l.bf16 %v2027_v53 }
 0x159   : > { %v740_v17 = vsel %vm733_vm3, %v731_v13, %v2023_v51  ;;  %v741_v19 = vsel %vm733_vm3, %v732_v14, %v2024_v4  ;;  %v747_v20 = vsel %vm742_vm5, %v738_v9, %v2028_v10  ;;  %v748_v25 = vsel %vm742_vm5, %v739_v61, %v2029_v8 }
 0x15a   : > { %v2032_v48 = vpop.permute.xlu1 %2031  ;;  %v2037_v50 = vpop.permute.xlu0 %2036 }
 0x15b   : > { %v2034_v11 = vunpack.i.h.bf16 %v2032_v48  ;;  %v2033_v12 = vunpack.i.l.bf16 %v2032_v48  ;;  %v2039_v15 = vunpack.i.h.bf16 %v2037_v50  ;;  %v2038_v5 = vunpack.i.l.bf16 %v2037_v50 }
 0x15d   : > { %v749_v27 = vsel %vm742_vm5, %v740_v17, %v2033_v12  ;;  %v750_v31 = vsel %vm742_vm5, %v741_v19, %v2034_v11  ;;  %v756_v57 = vsel %vm751_vm6, %v747_v20, %v2038_v5  ;;  %v757_v35 = vsel %vm751_vm6, %v748_v25, %v2039_v15  ;;  %v957_v17 = vld [vmem:[#allocation3 + $0x1] sm:$0xff] }
 0x15e   : > { %v2042_v55 = vpop.permute.xlu1 %2041  ;;  %v2047_v58 = vpop.permute.xlu0 %2046  ;;  %v965_v20 = vld [vmem:[#allocation3 + $0x2] sm:$0xff] }
 0x15f   : > { %v2049_v16 = vunpack.i.h.bf16 %v2047_v58  ;;  %v2048_v18 = vunpack.i.l.bf16 %v2047_v58  ;;  %v2044_v40 = vunpack.i.h.bf16 %v2042_v55  ;;  %v2043_v41 = vunpack.i.l.bf16 %v2042_v55 }
 0x161   : > { %v765_v43 = vsel %vm760_vm7, %v756_v57, %v2048_v18  ;;  %v766_v45 = vsel %vm760_vm7, %v757_v35, %v2049_v16  ;;  %v758_v3 = vsel %vm751_vm6, %v749_v27, %v2043_v41  ;;  %v759_v4 = vsel %vm751_vm6, %v750_v31, %v2044_v40 }
 0x162   : > { %v2052_v6 = vpop.permute.xlu1 %2051  ;;  %v2057_v7 = vpop.permute.xlu0 %2056 }
 0x163   : > { %v2059_v21 = vunpack.i.h.bf16 %v2057_v7  ;;  %v2058_v22 = vunpack.i.l.bf16 %v2057_v7  ;;  %v2054_v60 = vunpack.i.h.bf16 %v2052_v6  ;;  %v2053_v46 = vunpack.i.l.bf16 %v2052_v6 }
 0x165   : > { %v774_v53 = vsel %vm769_vm8, %v765_v43, %v2058_v22  ;;  %v775_v48 = vsel %vm769_vm8, %v766_v45, %v2059_v21  ;;  %v767_v7 = vsel %vm760_vm7, %v758_v3, %v2053_v46  ;;  %v768_v8 = vsel %vm760_vm7, %v759_v4, %v2054_v60 }
 0x166   : > { %v2062_v23 = vpop.permute.xlu1 %2061  ;;  %v2067_v24 = vpop.permute.xlu0 %2066 }
 0x167   : > { %v2069_v36 = vunpack.i.h.bf16 %v2067_v24  ;;  %v2068_v37 = vunpack.i.l.bf16 %v2067_v24  ;;  %v2064_v54 = vunpack.i.h.bf16 %v2062_v23  ;;  %v2063_v58 = vunpack.i.l.bf16 %v2062_v23 }
 0x169   : > { %v783_v63 = vsel %vm778_vm9, %v774_v53, %v2068_v37  ;;  %v784_v55 = vsel %vm778_vm9, %v775_v48, %v2069_v36  ;;  %v776_v12 = vsel %vm769_vm8, %v767_v7, %v2063_v58  ;;  %v777_v13 = vsel %vm769_vm8, %v768_v8, %v2064_v54 }
 0x16a   : > { %v2072_v50 = vpop.permute.xlu1 %2071  ;;  %v2077_v52 = vpop.permute.xlu0 %2076 }
 0x16b   : > { %v2079_v59 = vunpack.i.h.bf16 %v2077_v52  ;;  %v2078_v62 = vunpack.i.l.bf16 %v2077_v52  ;;  %v2074_v1 = vunpack.i.h.bf16 %v2072_v50  ;;  %v2073_v2 = vunpack.i.l.bf16 %v2072_v50 }
 0x16d   : > { %v792_v51 = vsel %vm787_vm10, %v783_v63, %v2078_v62  ;;  %v793_v6 = vsel %vm787_vm10, %v784_v55, %v2079_v59  ;;  %v785_v5 = vsel %vm778_vm9, %v776_v12, %v2073_v2  ;;  %v786_v61 = vsel %vm778_vm9, %v777_v13, %v2074_v1 }
 0x16e   : > { %v2779_v10 = vpack.c.bf16 %v793_v6, %v792_v51  ;;  %v2082_v11 = vpop.permute.xlu1 %2081 }
 0x16f   : > { %v2084_v14 = vunpack.i.h.bf16 %v2082_v11  ;;  %v2083_v15 = vunpack.i.l.bf16 %v2082_v11 }
 0x170   : > { %1823 = vmatprep.mubr.msk.bf16.mxu0 %vm827_vm11, %v2779_v10 }
 0x171   : > { %v794_v9 = vsel %vm787_vm10, %v785_v5, %v2083_v15  ;;  %v795_v16 = vsel %vm787_vm10, %v786_v61, %v2084_v14 }
 0x172   : > { %v2789_v18 = vpack.c.bf16 %v795_v16, %v794_v9 }
 0x174   : > { %1824 = vmatmul.mubr.msk.bf16.gmra.mrb[4].mxu0 %vm827_vm11, %v2789_v18 }
 0x175   : > { %1851 = vmatprep.mubr.msk.bf16.mxu0 %vm363_vm0, %v1518_v34 }
 0x17c   : > { %1852 = vmatmul.mubr.msk.bf16.vlgmr.msra.gmra.mrb[8].mxu0 %vm363_vm0, %v1519_v33 }
 0x17d   : > { %1855 = vmatprep.mubr.msk.bf16.mxu0 %vm363_vm0, %v1520_v42 }
 0x184   : > { %1856 = vmatmul.mubr.msk.bf16.gmra.mrb[12].mxu0 %vm363_vm0, %v1521_v56  ;;  %vm1328_vm0 = vcmask 457728  }
 0x227   : > { %v1821_v28 = vpop.f32.mrb[0].mxu0 }
 0x228   : > { %v887_v30 = vadd.f32 %v1821_v28, %v1760_v26  ;;  %v878_v32 = vpop.f32.mrb[1].mxu0 }
 0x229   : > { %v879_v33 = vadd.f32 %v1760_v26, %v878_v32  ;;  %v1822_v34 = vpop.f32.mrb[2].mxu0 }
 0x22a   : > { %v911_v38 = vmax.f32 %v887_v30, 0.0  ;;  %v890_v39 = vadd.f32 %v1822_v34, %v1760_v26  ;;  %v881_v42 = vpop.f32.mrb[3].mxu0 }
 0x22b   : > { %v909_v47 = vmax.f32 %v879_v33, 0.0  ;;  %v882_v49 = vadd.f32 %v1760_v26, %v881_v42 }
 0x22c   : > { %943 = vst.msk [vmem:[#allocation3 + $0x31] sm:$0xff] %vm733_vm3, %v911_v38  ;;  %v912_v56 = vmax.f32 %v890_v39, 0.0 }
 0x22d   : > { %941 = vst.msk [vmem:[#allocation3 + $0x11] sm:$0xff] %vm733_vm3, %v909_v47  ;;  %v910_v0 = vmax.f32 %v882_v49, 0.0 }
 0x22e   : > { %944 = vst.msk [vmem:[#allocation3 + $0x41] sm:$0xff] %vm733_vm3, %v912_v56 }
 0x22f   : > { %942 = vst.msk [vmem:[#allocation3 + $0x21] sm:$0xff] %vm733_vm3, %v910_v0 }
 0x233   : > { %v2852_v22 = vld [vmem:[#allocation3 + $0x30] sm:$0xff] }
 0x234   : > { %v958_v19 = vld [vmem:[#allocation3 + $0x11] sm:$0xff] }
 0x235   : > { %v2085_v21 = vpack.i.bf16 %v958_v19, %v957_v17  ;;  %v2854_v23 = vld [vmem:[#allocation3 + $0x40] sm:$0xff]  ;;  %v966_v25 = vld [vmem:[#allocation3 + $0x12] sm:$0xff] }
 0x236   : > { %v2095_v24 = vpack.i.bf16 %v2854_v23, %v2852_v22  ;;  %v2859_v27 = vld [vmem:[#allocation3 + $0x41] sm:$0xff]  ;;  %v2090_v31 = vpack.i.bf16 %v966_v25, %v965_v20  ;;  %v983_v57 = vld [vmem:[#allocation3 + $0x31] sm:$0xff] }
 0x237   : > { %2086 = vrot.lane.b32.xlu0 %v2085_v21, %s2359_s22  ;;  %v2100_v35 = vpack.i.bf16 %v2859_v27, %v983_v57  ;;  %v2863_v36 = vld [vmem:[#allocation3 + $0x20] sm:$0xff]  ;;  %v2867_v40 = vld [vmem:[#allocation3 + $0x10] sm:$0xff] }
 0x238   : > { %2096 = vrot.lane.b32.xlu1 %v2095_v24, %s2363_s15  ;;  %v992_v37 = vld [vmem:[#allocation3 + $0x42] sm:$0xff]  ;;  %v2120_v41 = vpack.i.bf16 %v2863_v36, %v2867_v40  ;;  %v991_v43 = vld [vmem:[#allocation3 + $0x32] sm:$0xff]  ;;  %v2135_v55 = vpack.i.bf16 %v2852_v22, %v2863_v36 }
 0x239   : > { %v2105_v45 = vpack.i.bf16 %v992_v37, %v991_v43  ;;  %v982_v60 = vld [vmem:[#allocation3 + $0x21] sm:$0xff] }
 0x23a   : > { %v2125_v46 = vpack.i.bf16 %v982_v60, %v958_v19  ;;  %v2110_v53 = vpack.i.bf16 %v983_v57, %v982_v60  ;;  %v990_v48 = vld [vmem:[#allocation3 + $0x22] sm:$0xff] }
 0x23b   : > { %2091 = vrot.lane.b32.xlu0 %v2090_v31, %s2361_s21  ;;  %v2130_v50 = vpack.i.bf16 %v990_v48, %v966_v25  ;;  %v2115_v52 = vpack.i.bf16 %v991_v43, %v990_v48  ;;  %v1005_v31 = vld [vmem:[#allocation3 + $0x90] sm:$0xff]  ;;  %v2248_v43 = vld [vmem:[%s3124_s3] sm:$0xff]  }
 0x23c   : > { %2101 = vrot.lane.b32.xlu1 %v2100_v35, %s2365_s29  ;;  %1827 = vmatprep.subr.bf16.mxu1 %v2248_v43 }
 0x23d   : > { %1828 = vmatpush3.bf16.msra.mxu1 %v2248_v43 }
 0x23f   : > { %2121 = vrot.lane.b32.xlu0 %v2120_v41, %s2363_s15  ;;  %v1013_v41 = vld [vmem:[#allocation3 + $0x91] sm:$0xff] }
 0x240   : > { %2106 = vrot.lane.b32.xlu1 %v2105_v45, %s2366_s8  ;;  %v2249_v45 = vld [vmem:[%s3124_s3 + $0x8] sm:$0xff]  }
 0x241   : > { %1829 = vmatprep.subr.bf16.mxu1 %v2249_v45 }
 0x242   : > { %1830 = vmatpush3.bf16.msra.mxu1 %v2249_v45 }
 0x243   : > { %2126 = vrot.lane.b32.xlu0 %v2125_v46, %s2365_s29  ;;  %v1021_v46 = vld [vmem:[#allocation3 + $0x92] sm:$0xff] }
 0x244   : > { %2111 = vrot.lane.b32.xlu1 %v2110_v53, %s2359_s22 }
 0x247   : > { %v1825_v54 = vpop.f32.mrb[4].mxu0  ;;  %2131 = vrot.lane.b32.xlu0 %v2130_v50, %s2366_s8  ;;  %v2251_v50 = vld [vmem:[%s3124_s3 + $0x18] sm:$0xff]  }
 0x248   : > { %v903_v58 = vadd.f32 %v1825_v54, %v1760_v26  ;;  %v894_v59 = vpop.f32.mrb[5].mxu0  ;;  %2116 = vrot.lane.b32.xlu1 %v2115_v52, %s2361_s21 }
 0x249   : > { %v895_v62 = vadd.f32 %v1760_v26, %v894_v59  ;;  %v1826_v63 = vpop.f32.mrb[6].mxu0 }
 0x24a   : > { %v915_v1 = vmax.f32 %v903_v58, 0.0  ;;  %v906_v2 = vadd.f32 %v1826_v63, %v1760_v26  ;;  %v897_v3 = vpop.f32.mrb[7].mxu0 }
 0x24b   : > { %v913_v4 = vmax.f32 %v895_v62, 0.0  ;;  %v898_v51 = vadd.f32 %v1760_v26, %v897_v3  ;;  %2136 = vrot.lane.b32.xlu0 %v2135_v55, %s2367_s11 }
 0x24c   : > { %947 = vst.msk [vmem:[#allocation3 + $0x71] sm:$0xff] %vm733_vm3, %v915_v1  ;;  %v916_v6 = vmax.f32 %v906_v2, 0.0 }
 0x24d   : > { %945 = vst.msk [vmem:[#allocation3 + $0x51] sm:$0xff] %vm733_vm3, %v913_v4  ;;  %v914_v7 = vmax.f32 %v898_v51, 0.0  ;;  %v949_v51 = vld [vmem:[#allocation3] sm:$0xff] }
 0x24e   : > { %948 = vst.msk [vmem:[#allocation3 + $0x81] sm:$0xff] %vm733_vm3, %v916_v6 }
 0x24f   : > { %946 = vst.msk [vmem:[#allocation3 + $0x61] sm:$0xff] %vm733_vm3, %v914_v7  ;;  %v2884_v8 = vpop.f32.mrb[8].mxu0  ;;  %2141 = vrot.lane.b32.xlu0 %v2110_v53, %s2368_s17  ;;  %v2250_v53 = vld [vmem:[%s3124_s3 + $0x10] sm:$0xff]  }
 0x250   : > { %v2887_v11 = vpop.f32.mrb[9].mxu0  ;;  %1831 = vmatprep.subr.bf16.mxu1 %v2250_v53 }
 0x251   : > { %v2889_v12 = vpop.f32.mrb[10].mxu0  ;;  %1832 = vmatpush3.bf16.msra.mxu1 %v2250_v53 }
 0x252   : > { %v2891_v13 = vpop.f32.mrb[11].mxu0  ;;  %1833 = vmatprep.subr.bf16.mxu1 %v2251_v50 }
 0x253   : > { %2146 = vrot.lane.b32.xlu0 %v2115_v52, %s2369_s18  ;;  %v2917_v42 = vld [vmem:[#allocation3 + $0x70] sm:$0xff]  ;;  %v2252_v52 = vld [vmem:[%s3124_s3 + $0x20] sm:$0xff]  }
 0x254   : > { %v2894_v14 = vld [vmem:[#allocation3 + $0x50] sm:$0xff] }
 0x255   : > { %v1017_v15 = vld [vmem:[#allocation3 + $0x52] sm:$0xff]  ;;  %v2150_v5 = vpack.i.bf16 %v2894_v14, %v2854_v23  ;;  %v980_v38 = vld [vmem:[#allocation3 + $0x80] sm:$0xff]  ;;  %1834 = vmatpush3.bf16.msra.mxu1 %v2251_v50 }
 0x256   : > { %v2165_v61 = vpack.i.bf16 %v1017_v15, %v992_v37  ;;  %v1009_v9 = vld [vmem:[#allocation3 + $0x51] sm:$0xff]  ;;  %v2909_v33 = vld [vmem:[#allocation3 + $0x60] sm:$0xff]  ;;  %v2175_v47 = vpack.i.bf16 %v980_v38, %v2917_v42  ;;  %v2190_v57 = vpack.i.bf16 %v1005_v31, %v980_v38  ;;  %1835 = vmatprep.subr.bf16.mxu1 %v2252_v52 }
 0x257   : > { %v2898_v16 = vpop.f32.mrb[12].mxu0  ;;  %2151 = vrot.lane.b32.xlu1 %v2150_v5, %s2367_s11  ;;  %v2155_v30 = vpack.i.bf16 %v1009_v9, %v2859_v27  ;;  %v2210_v34 = vpack.i.bf16 %v2909_v33, %v2894_v14  ;;  %v986_v39 = vld [vmem:[#allocation3 + $0x61] sm:$0xff]  ;;  %v987_v17 = vld [vmem:[#allocation3 + $0x71] sm:$0xff]  ;;  %v2225_v27 = vpack.i.bf16 %v2917_v42, %v2909_v33 }
 0x258   : > { %2166 = vrot.lane.b32.xlu0 %v2165_v61, %s2369_s18  ;;  %v2902_v26 = vpop.f32.mrb[13].mxu0  ;;  %v2215_v49 = vpack.i.bf16 %v986_v39, %v1009_v9  ;;  %v988_v56 = vld [vmem:[#allocation3 + $0x81] sm:$0xff]  ;;  %v995_v20 = vld [vmem:[#allocation3 + $0x72] sm:$0xff]  ;;  %v2230_v35 = vpack.i.bf16 %v987_v17, %v986_v39 }
 0x259   : > { %v2904_v28 = vpop.f32.mrb[14].mxu0  ;;  %v994_v0 = vld [vmem:[#allocation3 + $0x62] sm:$0xff]  ;;  %v2180_v19 = vpack.i.bf16 %v988_v56, %v987_v17  ;;  %v2205_v60 = vpack.i.bf16 %v1013_v41, %v988_v56  ;;  %1836 = vmatpush3.bf16.msra.mxu1 %v2252_v52  ;;  %v2254_v17 = vld [vmem:[%s3124_s3 + $0x30] sm:$0x3f]  }
 0x25a   : > { %v2907_v32 = vpop.f32.mrb[15].mxu0  ;;  %v2220_v21 = vpack.i.bf16 %v994_v0, %v1017_v15  ;;  %v996_v24 = vld [vmem:[#allocation3 + $0x82] sm:$0xff]  ;;  %v2235_v37 = vpack.i.bf16 %v995_v20, %v994_v0 }
 0x25b   : > { %2156 = vrot.lane.b32.xlu1 %v2155_v30, %s2368_s17  ;;  %v2185_v25 = vpack.i.bf16 %v996_v24, %v995_v20  ;;  %v2240_v48 = vpack.i.bf16 %v1021_v46, %v996_v24  ;;  %v2253_v0 = vld [vmem:[%s3124_s3 + $0x28] sm:$0xff]   ;;  %v1443_v46 = vsel %vm1441_vm2, %v2254_v17, 0 }
 0x25c   : > { %2171 = vrot.lane.b32.xlu0 %v2165_v61, %s2361_s21  ;;  %1837 = vmatprep.subr.bf16.mxu1 %v2253_v0 }
 0x25d   : > { %1838 = vmatpush3.bf16.msra.mxu1 %v2253_v0 }
 0x25e   : > { %1860 = vmatprep.subr.msk.bf16.mxu1 %vm1441_vm2, %v2254_v17 }
 0x25f   : > { %2161 = vrot.lane.b32.xlu1 %v2155_v30, %s2359_s22 }
 0x260   : > { %2211 = vrot.lane.b32.xlu0 %v2210_v34, %s2363_s15 }
 0x261   : > { %1840 = vmatpush3.bf16.msra.mxu1 %v1443_v46 }
 0x263   : > { %2176 = vrot.lane.b32.xlu1 %v2175_v47, %s2363_s15  ;;  %s1660_s15 = scalar_lea.sflag [#allocation6], %s2516_s16 }
 0x264   : > { %2216 = vrot.lane.b32.xlu0 %v2215_v49, %s2365_s29 }
 0x267   : > { %2181 = vrot.lane.b32.xlu1 %v2180_v19, %s2365_s29  ;;  %s2289_s29 = sshll.u32 %s2371_s28, 4  ;;  %s2290_s29 = int_to_ptr.vmem [resolvable:$false] %s2289_s29 }
 0x268   : > { %2221 = vrot.lane.b32.xlu0 %v2220_v21, %s2366_s8  ;;  %s2291_s20 = scalar_lea.vmem %s2290_s29, 256 }
 0x26b   : > { %2186 = vrot.lane.b32.xlu1 %v2185_v25, %s2366_s8 }
 0x26c   : > { %2226 = vrot.lane.b32.xlu0 %v2225_v27, %s2367_s11 }
 0x26f   : > { %2191 = vrot.lane.b32.xlu1 %v2190_v57, %s2367_s11 }
 0x270   : > { %2231 = vrot.lane.b32.xlu0 %v2230_v35, %s2368_s17 }
 0x273   : > { %2196 = vrot.lane.b32.xlu1 %v2230_v35, %s2359_s22 }
 0x274   : > { %2236 = vrot.lane.b32.xlu0 %v2235_v37, %s2369_s18 }
 0x277   : > { %2201 = vrot.lane.b32.xlu1 %v2235_v37, %s2361_s21  ;;  %s1751_s21 = sshll.u32 %s2516_s16, 3 }
 0x278   : > { %s296_s9 = scalar_lea.vmem [#allocation7], %s1751_s21 }
 0x279   : > { %s1673_s8 = sshll.u32 %s296_s9, 4  ;;  %s3078_s8 = int_to_ptr.vmem [resolvable:$true] %s1673_s8 }
 0x27a   : > { %p2292_p8 = scmp.lt.s32.totalorder %s3078_s8, %s2290_s29 }
 0x27b   : > { %2206 = vrot.lane.b32.xlu1 %v2205_v60, %s2368_s17 }
 0x27f   : > { %2241 = vrot.lane.b32.xlu1 %v2240_v48, %s2369_s18  ;;  %s3076_s18 = scalar_lea.hbm %s3128_s7, %s1786_s19 }
 0x2a9   : > { %v2087_v54 = vpop.permute.xlu0 %2086 }
 0x2aa   : > { %v2950_v58 = vpop.permute.xlu1 %2096  ;;  %v2088_v4 = vunpack.i.l.bf16 %v2087_v54  ;;  %v2089_v6 = vunpack.i.h.bf16 %v2087_v54 }
 0x2ab   : > { %v2099_v15 = vunpack.i.h.bf16 %v2950_v58  ;;  %v2098_v9 = vunpack.i.l.bf16 %v2950_v58 }
 0x2ac   : > { %v1278_v61 = vsel %vm733_vm3, %v949_v51, %v2088_v4  ;;  %v1279_v39 = vsel %vm733_vm3, %v2867_v40, %v2089_v6 }
 0x2ad   : > { %v2092_v59 = vpop.permute.xlu0 %2091 }
 0x2ae   : > { %v2952_v62 = vpop.permute.xlu1 %2101  ;;  %v2093_v7 = vunpack.i.l.bf16 %v2092_v59  ;;  %v2094_v30 = vunpack.i.h.bf16 %v2092_v59 }
 0x2b0   : > { %v1286_v47 = vsel %vm751_vm6, %v1278_v61, %v2093_v7  ;;  %v1287_v57 = vsel %vm751_vm6, %v1279_v39, %v2094_v30  ;;  %v2104_v30 = vunpack.i.h.bf16 %v2952_v62 }
 0x2b1   : > { %v2122_v63 = vpop.permute.xlu0 %2121 }
 0x2b2   : > { %v2954_v55 = vpop.permute.xlu1 %2106  ;;  %v2123_v34 = vunpack.i.l.bf16 %v2122_v63  ;;  %v2124_v49 = vunpack.i.h.bf16 %v2122_v63 }
 0x2b4   : > { %v1294_v35 = vsel %vm769_vm8, %v1286_v47, %v2123_v34  ;;  %v1295_v43 = vsel %vm769_vm8, %v1287_v57, %v2124_v49  ;;  %v2103_v34 = vunpack.i.l.bf16 %v2952_v62 }
 0x2b5   : > { %v2127_v1 = vpop.permute.xlu0 %2126 }
 0x2b6   : > { %v2112_v2 = vpop.permute.xlu1 %2111  ;;  %v2129_v56 = vunpack.i.h.bf16 %v2127_v1  ;;  %v2128_v19 = vunpack.i.l.bf16 %v2127_v1 }
 0x2b7   : > { %v2114_v21 = vunpack.i.h.bf16 %v2112_v2  ;;  %v2113_v24 = vunpack.i.l.bf16 %v2112_v2 }
 0x2b8   : > { %v1302_v53 = vsel %vm787_vm10, %v1294_v35, %v2128_v19  ;;  %v1303_v48 = vsel %vm787_vm10, %v1295_v43, %v2129_v56 }
 0x2b9   : > { %v2132_v3 = vpop.permute.xlu0 %2131  ;;  %v1281_v50 = vsel %vm733_vm3, %v2852_v22, %v2114_v21  ;;  %v1280_v52 = vsel %vm733_vm3, %v2863_v36, %v2113_v24 }
 0x2ba   : > { %v2117_v38 = vpop.permute.xlu1 %2116  ;;  %v2134_v20 = vunpack.i.h.bf16 %v2132_v3  ;;  %v2133_v25 = vunpack.i.l.bf16 %v2132_v3 }
 0x2bb   : > { %v2119_v27 = vunpack.i.h.bf16 %v2117_v38  ;;  %v2118_v40 = vunpack.i.l.bf16 %v2117_v38 }
 0x2bc   : > { %v1311_v54 = vsel %vm1310_vm14, %v1302_v53, %v2133_v25  ;;  %v1312_v58 = vsel %vm1310_vm14, %v1303_v48, %v2134_v20 }
 0x2bd   : > { %v2137_v5 = vpop.permute.xlu0 %2136  ;;  %v1288_v59 = vsel %vm751_vm6, %v1280_v52, %v2118_v40  ;;  %v1289_v63 = vsel %vm751_vm6, %v1281_v50, %v2119_v27 }
 0x2be   : > { %v2139_v37 = vunpack.i.h.bf16 %v2137_v5  ;;  %v2138_v41 = vunpack.i.l.bf16 %v2137_v5  ;;  %v1296_v6 = vsel %vm769_vm8, %v1288_v59, %v2098_v9  ;;  %v1297_v7 = vsel %vm769_vm8, %v1289_v63, %v2099_v15 }
 0x2bf   : > { %v1304_v0 = vsel %vm787_vm10, %v1296_v6, %v2103_v34  ;;  %v1305_v17 = vsel %vm787_vm10, %v1297_v7, %v2104_v30  ;;  %v2109_v15 = vunpack.i.h.bf16 %v2954_v55  ;;  %v2108_v9 = vunpack.i.l.bf16 %v2954_v55 }
 0x2c0   : > { %v1320_v2 = vsel %vm1319_vm15, %v1311_v54, %v2138_v41  ;;  %v1321_v3 = vsel %vm1319_vm15, %v1312_v58, %v2139_v37 }
 0x2c1   : > { %v2142_v31 = vpop.permute.xlu0 %2141  ;;  %v1313_v62 = vsel %vm1310_vm14, %v1304_v0, %v2108_v9  ;;  %v1314_v24 = vsel %vm1310_vm14, %v1305_v17, %v2109_v15 }
 0x2c2   : > { %v2144_v45 = vunpack.i.h.bf16 %v2142_v31  ;;  %v2143_v60 = vunpack.i.l.bf16 %v2142_v31 }
 0x2c4   : > { %v1329_v22 = vsel %vm1328_vm0, %v1320_v2, %v2143_v60  ;;  %v1330_v36 = vsel %vm1328_vm0, %v1321_v3, %v2144_v45 }
 0x2c5   : > { %v2147_v1 = vpop.permute.xlu0 %2146 }
 0x2c6   : > { %v2149_v4 = vunpack.i.h.bf16 %v2147_v1  ;;  %v2148_v51 = vunpack.i.l.bf16 %v2147_v1 }
 0x2c8   : > { %v1338_v5 = vsel %vm1337_vm1, %v1329_v22, %v2148_v51  ;;  %v1339_v61 = vsel %vm1337_vm1, %v1330_v36, %v2149_v4 }
 0x2c9   : > { %v2152_v38 = vpop.permute.xlu1 %2151  ;;  %v1346_v47 = vpack.c.bf16 %v1339_v61, %v1338_v5 }
 0x2ca   : > { %v2167_v39 = vpop.permute.xlu0 %2166  ;;  %v2154_v49 = vunpack.i.h.bf16 %v2152_v38  ;;  %v2153_v56 = vunpack.i.l.bf16 %v2152_v38 }
 0x2cb   : > { %1354 = vrot.lane.b32.xlu0 %v1346_v47, %s2370_s12  ;;  %v2169_v31 = vunpack.i.h.bf16 %v2167_v39  ;;  %v2168_v57 = vunpack.i.l.bf16 %v2167_v39 }
 0x2cc   : > { %v1322_v27 = vsel %vm1319_vm15, %v1313_v62, %v2153_v56  ;;  %v1323_v40 = vsel %vm1319_vm15, %v1314_v24, %v2154_v49 }
 0x2cd   : > { %v2157_v19 = vpop.permute.xlu1 %2156 }
 0x2ce   : > { %v2172_v21 = vpop.permute.xlu0 %2171  ;;  %v2159_v20 = vunpack.i.h.bf16 %v2157_v19  ;;  %v2158_v25 = vunpack.i.l.bf16 %v2157_v19 }
 0x2cf   : > { %v2174_v63 = vunpack.i.h.bf16 %v2172_v21  ;;  %v2173_v1 = vunpack.i.l.bf16 %v2172_v21 }
 0x2d0   : > { %v1331_v35 = vsel %vm1328_vm0, %v1322_v27, %v2158_v25  ;;  %v1332_v37 = vsel %vm1328_vm0, %v1323_v40, %v2159_v20 }
 0x2d1   : > { %v2162_v41 = vpop.permute.xlu1 %2161  ;;  %v1340_v43 = vsel %vm1337_vm1, %v1331_v35, %v2168_v57  ;;  %v1341_v45 = vsel %vm1337_vm1, %v1332_v37, %v2169_v31 }
 0x2d2   : > { %v2212_v55 = vpop.permute.xlu0 %2211  ;;  %v1347_v60 = vpack.c.bf16 %v1341_v45, %v1340_v43  ;;  %v2164_v48 = vunpack.i.h.bf16 %v2162_v41  ;;  %v2163_v50 = vunpack.i.l.bf16 %v2162_v41 }
 0x2d3   : > { %v2214_v22 = vunpack.i.h.bf16 %v2212_v55  ;;  %v2213_v36 = vunpack.i.l.bf16 %v2212_v55 }
 0x2d4   : > { %1356 = vrot.lane.b32.xlu1 %v1347_v60, %s2370_s12  ;;  %v1283_v58 = vsel %vm733_vm3, %v2894_v14, %v2164_v48  ;;  %v1282_v59 = vsel %vm733_vm3, %v2854_v23, %v2163_v50 }
 0x2d5   : > { %v2177_v46 = vpop.permute.xlu1 %2176  ;;  %v1290_v4 = vsel %vm751_vm6, %v1282_v59, %v2173_v1  ;;  %v1291_v51 = vsel %vm751_vm6, %v1283_v58, %v2174_v63 }
 0x2d6   : > { %v2217_v53 = vpop.permute.xlu0 %2216  ;;  %v1298_v5 = vsel %vm769_vm8, %v1290_v4, %v2213_v36  ;;  %v1299_v61 = vsel %vm769_vm8, %v1291_v51, %v2214_v22  ;;  %v2179_v45 = vunpack.i.h.bf16 %v2177_v46  ;;  %v2178_v60 = vunpack.i.l.bf16 %v2177_v46 }
 0x2d7   : > { %v2219_v6 = vunpack.i.h.bf16 %v2217_v53  ;;  %v2218_v7 = vunpack.i.l.bf16 %v2217_v53 }
 0x2d9   : > { %v3007_v52 = vpop.permute.xlu1 %2181  ;;  %v1306_v56 = vsel %vm787_vm10, %v1298_v5, %v2218_v7  ;;  %v1307_v0 = vsel %vm787_vm10, %v1299_v61, %v2219_v6 }
 0x2da   : > { %v2222_v54 = vpop.permute.xlu0 %2221  ;;  %v2184_v50 = vunpack.i.h.bf16 %v3007_v52 }
 0x2db   : > { %v2224_v14 = vunpack.i.h.bf16 %v2222_v54  ;;  %v2223_v30 = vunpack.i.l.bf16 %v2222_v54  ;;  %v2183_v54 = vunpack.i.l.bf16 %v3007_v52 }
 0x2dd   : > { %v2187_v2 = vpop.permute.xlu1 %2186  ;;  %v1315_v17 = vsel %vm1310_vm14, %v1306_v56, %v2223_v30  ;;  %v1316_v15 = vsel %vm1310_vm14, %v1307_v0, %v2224_v14 }
 0x2de   : > { %v2227_v3 = vpop.permute.xlu0 %2226  ;;  %v2189_v63 = vunpack.i.h.bf16 %v2187_v2  ;;  %v2188_v1 = vunpack.i.l.bf16 %v2187_v2 }
 0x2df   : > { %v2229_v38 = vunpack.i.h.bf16 %v2227_v3  ;;  %v2228_v39 = vunpack.i.l.bf16 %v2227_v3 }
 0x2e1   : > { %v2192_v34 = vpop.permute.xlu1 %2191  ;;  %v1324_v21 = vsel %vm1319_vm15, %v1315_v17, %v2228_v39  ;;  %v1325_v62 = vsel %vm1319_vm15, %v1316_v15, %v2229_v38 }
 0x2e2   : > { %v2232_v23 = vpop.permute.xlu0 %2231  ;;  %v2194_v4 = vunpack.i.h.bf16 %v2192_v34  ;;  %v2193_v51 = vunpack.i.l.bf16 %v2192_v34 }
 0x2e3   : > { %v2234_v47 = vunpack.i.h.bf16 %v2232_v23  ;;  %v2233_v49 = vunpack.i.l.bf16 %v2232_v23 }
 0x2e5   : > { %v2197_v9 = vpop.permute.xlu1 %2196  ;;  %v1333_v25 = vsel %vm1328_vm0, %v1324_v21, %v2233_v49  ;;  %v1334_v27 = vsel %vm1328_vm0, %v1325_v62, %v2234_v47  ;;  %v1768_v62 = vld [vmem:[%s3125_s4] ss:$0 sm:$0xff] }
 0x2e6   : > { %v2237_v19 = vpop.permute.xlu0 %2236  ;;  %v2199_v40 = vunpack.i.h.bf16 %v2197_v9  ;;  %v2198_v31 = vunpack.i.l.bf16 %v2197_v9 }
 0x2e7   : > { %v2239_v24 = vunpack.i.h.bf16 %v2237_v19  ;;  %v2238_v20 = vunpack.i.l.bf16 %v2237_v19 }
 0x2e8   : > { %v1285_v53 = vsel %vm733_vm3, %v2917_v42, %v2199_v40  ;;  %v1284_v48 = vsel %vm733_vm3, %v2909_v33, %v2198_v31  ;;  %vm1432_vm3 = vcmask 883712  }
 0x2e9   : > { %v1342_v57 = vsel %vm1337_vm1, %v1333_v25, %v2238_v20  ;;  %v1343_v35 = vsel %vm1337_vm1, %v1334_v27, %v2239_v24  ;;  %v2202_v37 = vpop.permute.xlu1 %2201 }
 0x2ea   : > { %v1348_v41 = vpack.c.bf16 %v1343_v35, %v1342_v57  ;;  %v2204_v55 = vunpack.i.h.bf16 %v2202_v37  ;;  %v2203_v43 = vunpack.i.l.bf16 %v2202_v37 }
 0x2ec   : > { %1358 = vrot.lane.b32.xlu0 %v1348_v41, %s2370_s12  ;;  %v1292_v58 = vsel %vm751_vm6, %v1284_v48, %v2203_v43  ;;  %v1293_v59 = vsel %vm751_vm6, %v1285_v53, %v2204_v55 }
 0x2ed   : > { %v1300_v46 = vsel %vm769_vm8, %v1292_v58, %v2178_v60  ;;  %v1301_v3 = vsel %vm769_vm8, %v1293_v59, %v2179_v45  ;;  %v2207_v42 = vpop.permute.xlu1 %2206 }
 0x2ee   : > { %v1308_v33 = vsel %vm787_vm10, %v1300_v46, %v2183_v54  ;;  %v1309_v22 = vsel %vm787_vm10, %v1301_v3, %v2184_v50  ;;  %v2209_v36 = vunpack.i.h.bf16 %v2207_v42  ;;  %v2208_v6 = vunpack.i.l.bf16 %v2207_v42 }
 0x2ef   : > { %v1317_v52 = vsel %vm1310_vm14, %v1308_v33, %v2188_v1  ;;  %v1318_v7 = vsel %vm1310_vm14, %v1309_v22, %v2189_v63 }
 0x2f0   : > { %v1326_v5 = vsel %vm1319_vm15, %v1317_v52, %v2193_v51  ;;  %v1327_v2 = vsel %vm1319_vm15, %v1318_v7, %v2194_v4 }
 0x2f1   : > { %v2242_v61 = vpop.permute.xlu1 %2241  ;;  %v1335_v23 = vsel %vm1328_vm0, %v1326_v5, %v2208_v6  ;;  %v1336_v34 = vsel %vm1328_vm0, %v1327_v2, %v2209_v36 }
 0x2f2   : > { %v2244_v14 = vunpack.i.h.bf16 %v2242_v61  ;;  %v2243_v30 = vunpack.i.l.bf16 %v2242_v61 }
 0x2f4   : > { %v1344_v38 = vsel %vm1337_vm1, %v1335_v23, %v2243_v30  ;;  %v1345_v39 = vsel %vm1337_vm1, %v1336_v34, %v2244_v14 }
 0x2f5   : > { %v1349_v47 = vpack.c.bf16 %v1345_v39, %v1344_v38 }
 0x2f7   : > { %1360 = vrot.lane.b32.xlu1 %v1349_v47, %s2370_s12  ;;  %s2285_s12 = scalar_lea.vmem %s3078_s8, 128 }
 0x2f8   : > { %p2286_p6 = scmp.ne.s32.totalorder %s3078_s8, %s2285_s12  ;;  %p2293_p10 = scmp.lt.s32.totalorder %s2291_s20, %s2285_s12 }
 0x2fa   : > { %p2287_p12 = pnand %p2286_p6, %p3135_p11  ;;  %p2294_p0 = por %p2293_p10, %p2292_p8 }
 0x2fc   : > { %p2288_p13 = pneg %p2287_p12 }
 0x2fe   : > { %p2295_p2 = pnand %p2294_p0, %p2288_p13 }
 0x33d   : > { %v1355_v49 = vpop.permute.xlu0 %1354 }
 0x33e   : > { %v1363_v56 = vsel %vm827_vm11, %v2734_v29, %v1355_v49  ;;  %v1780_v29 = vld [vmem:[%s3127_s6] ss:$0 sm:$0xff] }
 0x33f   : > { %1841 = vmatprep.mubr.msk.bf16.mxu1 %vm1432_vm3, %v1363_v56  ;;  %v1580_v24 = vadd.f32 %v1780_v29, %v2887_v11  ;;  %v1596_v58 = vadd.f32 %v1780_v29, %v2902_v26  ;;  %v1607_v63 = vadd.f32 %v2904_v28, %v1780_v29  ;;  %v1599_v3 = vadd.f32 %v1780_v29, %v2907_v32 }
 0x341   : > { %v1610_v55 = vmax.f32 %v1580_v24, 0.0  ;;  %v1614_v6 = vmax.f32 %v1596_v58, 0.0  ;;  %v1617_v7 = vmax.f32 %v1607_v63, 0.0  ;;  %v1615_v2 = vmax.f32 %v1599_v3, 0.0 }
 0x346   : > { %v1357_v0 = vpop.permute.xlu1 %1356 }
 0x347   : > { %v1365_v17 = vsel %vm827_vm11, %v2744_v44, %v1357_v0  ;;  %v1588_v44 = vadd.f32 %v2884_v8, %v1780_v29 }
 0x348   : > { %1842 = vmatmul.mubr.msk.bf16.vlgmr.msra.gmra.mrb[0].mxu1 %vm1432_vm3, %v1365_v17 }
 0x349   : > { %v1612_v57 = vmax.f32 %v1588_v44, 0.0 }
 0x35e   : > { %v1359_v15 = vpop.permute.xlu0 %1358 }
 0x35f   : > { %v1367_v9 = vsel %vm827_vm11, %v2779_v10, %v1359_v15  ;;  %v1591_v10 = vadd.f32 %v2889_v12, %v1780_v29 }
 0x360   : > { %1845 = vmatprep.mubr.msk.bf16.mxu1 %vm1432_vm3, %v1367_v9 }
 0x361   : > { %v1613_v60 = vmax.f32 %v1591_v10, 0.0 }
 0x369   : > { %v1361_v19 = vpop.permute.xlu1 %1360 }
 0x36a   : > { %v1369_v21 = vsel %vm827_vm11, %v2789_v18, %v1361_v19  ;;  %v1583_v18 = vadd.f32 %v1780_v29, %v2891_v13  ;;  %v1604_v13 = vadd.f32 %v2898_v16, %v1780_v29 }
 0x36b   : > { %1846 = vmatmul.mubr.msk.bf16.gmra.mrb[4].mxu1 %vm1432_vm3, %v1369_v21 }
 0x36c   : > { %v1611_v11 = vmax.f32 %v1583_v18, 0.0  ;;  %v1616_v51 = vmax.f32 %v1604_v13, 0.0 }
 0x41b   : > { %v1843_v20 = vpop.f32.mrb[0].mxu1 }
 0x41c   : > { %v1488_v25 = vadd.f32 %v1843_v20, %v1768_v62  ;;  %v1479_v27 = vpop.f32.mrb[1].mxu1 }
 0x41d   : > { %v1480_v40 = vadd.f32 %v1768_v62, %v1479_v27  ;;  %v1844_v31 = vpop.f32.mrb[2].mxu1 }
 0x41e   : > { %v1512_v35 = vmax.f32 %v1488_v25, 0.0  ;;  %v1491_v37 = vadd.f32 %v1844_v31, %v1768_v62  ;;  %v1482_v41 = vpop.f32.mrb[3].mxu1 }
 0x41f   : > { %v1510_v43 = vmax.f32 %v1480_v40, 0.0  ;;  %v1483_v45 = vadd.f32 %v1768_v62, %v1482_v41 }
 0x420   : > { %v1620_v8 = vadd.f32 %v1612_v57, %v1512_v35  ;;  %v1513_v53 = vmax.f32 %v1491_v37, 0.0 }
 0x421   : > { %v1511_v48 = vmax.f32 %v1483_v45, 0.0  ;;  %v1618_v50 = vadd.f32 %v1610_v55, %v1510_v43 }
 0x422   : > { %v1621_v12 = vadd.f32 %v1613_v60, %v1513_v53 }
 0x423   : > { %v1619_v54 = vadd.f32 %v1611_v11, %v1511_v48  ;;  %1626 = vxpose.xlu0.b32.start [1/8] (short) (narrow) %v1618_v50, 8 }
 0x427   : > { %1627 = vxpose.xlu0.b32.cont [2/8] (short) (narrow) %v1619_v54, 8 }
 0x42b   : > { %1628 = vxpose.xlu0.b32.cont [3/8] (short) (narrow) %v1620_v8, 8 }
 0x42f   : > { %1629 = vxpose.xlu0.b32.cont [4/8] (short) (narrow) %v1621_v12, 8 }
 0x43e   : > { %v1847_v59 = vpop.f32.mrb[4].mxu1 }
 0x43f   : > { %v1504_v1 = vadd.f32 %v1847_v59, %v1768_v62  ;;  %v1495_v46 = vpop.f32.mrb[5].mxu1 }
 0x440   : > { %v1496_v42 = vadd.f32 %v1768_v62, %v1495_v46  ;;  %v1848_v4 = vpop.f32.mrb[6].mxu1 }
 0x441   : > { %v1516_v33 = vmax.f32 %v1504_v1, 0.0  ;;  %v1507_v22 = vadd.f32 %v1848_v4, %v1768_v62  ;;  %v1498_v36 = vpop.f32.mrb[7].mxu1 }
 0x442   : > { %v1514_v52 = vmax.f32 %v1496_v42, 0.0  ;;  %v1499_v16 = vadd.f32 %v1768_v62, %v1498_v36 }
 0x443   : > { %v1624_v26 = vadd.f32 %v1616_v51, %v1516_v33  ;;  %v1517_v5 = vmax.f32 %v1507_v22, 0.0 }
 0x444   : > { %v1622_v28 = vadd.f32 %v1614_v6, %v1514_v52  ;;  %v1515_v61 = vmax.f32 %v1499_v16, 0.0 }
 0x445   : > { %v1625_v14 = vadd.f32 %v1617_v7, %v1517_v5 }
 0x446   : > { %v1623_v32 = vadd.f32 %v1615_v2, %v1515_v61  ;;  %1630 = vxpose.xlu0.b32.cont [5/8] (short) (narrow) %v1622_v28, 8 }
 0x44a   : > { %1631 = vxpose.xlu0.b32.cont [6/8] (short) (narrow) %v1623_v32, 8 }
 0x44e   : > { %1632 = vxpose.xlu0.b32.cont [7/8] (short) (narrow) %v1624_v26, 8 }
 0x452   : > { %1633 = vxpose.xlu0.b32.end [8/8] (short) (narrow) %v1625_v14, 8 }
 0x4b6   : > { %v1642_v30 = vpop.trf.xlu0 }
 0x4b7   : > { %1658 = vst.msk [vmem:[%s296_s9] sm:$0xff] %vm1337_vm1, %v1642_v30 }
 0x4b8   : > { %2298 = shalt.err (!%p2295_p2)
}
 0x4b9   : > { %s2299_s16 = scalar_lea.hbm %s3076_s18, 128  ;;  %s2303_s21 = scalar_lea.hbm %s3128_s7, 256 }
 0x4ba   : > { %p2300_p4 = scmp.ne.s32.totalorder %s3076_s18, %s2299_s16  ;;  %p2304_p9 = scmp.lt.u32.totalorder %s3076_s18, %s3128_s7 }
 0x4bb   : > { %p2305_p1 = scmp.lt.u32.totalorder %s2303_s21, %s2299_s16  ;;  %p2307_p6 = scmp.lt.u32.totalorder %s2299_s16, %s3076_s18 }
 0x4bc   : > { %p2301_p5 = pnand %p2300_p4, %p3135_p11 }
 0x4bd   : > { %p2306_p3 = por %p2305_p1, %p2304_p9 }
 0x4be   : > { %p2302_p7 = pneg %p2301_p5 }
 0x4bf   : > { %p2308_p12 = por %p2307_p6, %p2306_p3 }
 0x4c1   : > { %p2309_p13 = pnand %p2308_p12, %p2302_p7 }
 0x4c3   : > { %2312 = shalt.err (!%p2309_p13)
}
 0x4c4   : > { %1864 = dma.vmem_to_hbm [thread:$0]  (%p3135_p11), %s3078_s8, 128, %s3076_s18, %s1660_s15  }
 0x4c5 PF: > { %s1685_s11 = sand.u32 1, %s2339_s24   ;;  %p3136_p8 = scmp.ne.s32.totalorder %s3133_s14, 0 }
 0x4c6   : > { %p3137_p10 = scmp.ge.s32.totalorder %s2351_s27, 2  ;;  %s1686_s17 = scalar_lea.sflag [#allocation6], %s1685_s11 }
 0x4c8   : > { %p1871_p0 = pnand %p3137_p10, %p3136_p8 }
 0x4ca   : > { %2334 = dma.done.wait (!%p1871_p0), %s1686_s17, 128  }
 0x4cb   : > { %2336 = vsyncadd (!%p1871_p0), %s1686_s17, 4294967168  ;;  %p20_p2 = scmp.ge.s32.totalorder %s2437_s30, 4   ;;  %s3138_s24 = smov %s2343_s25 }
 0x4cc   : > { %s3139_s25 = smov %s2347_s26  ;;  %s3140_s26 = smov %s2449_s10 }
 0x4cd   : > { %s3141_s27 = smov %s2437_s30  ;;  %22 = sbr.rel (!%p20_p2) target bundleno = 5 (0x5), region = 100 }
 0x4d4   :  { %1691 = vsyncpa [#allocation5], 1 }
 0x4d5   :  { %1693 = vsyncpa [#allocation5 + $0x1], 1 }
 0x4d6   :  { %1694 = vsyncpa [#allocation6], 1 }
 0x4d7   :  { %1696 = vsyncpa [#allocation6 + $0x1], 1 }

</bundles_post_ra>
